<compile_context>
chip_gen: v7x
topology: tpu7x:2x2x1
jax: 0.10.0
libtpu: 0.0.40
codegen_flags: <defaults>
</compile_context>

<pallas_src>
import math
import functools

import jax
import jax.numpy as jnp
from jax import lax
from jax.experimental import pallas as pl
from jax.experimental.pallas import tpu as pltpu


def _gdcb_kernel(x_ref, o_ref, *, nlv_bcd):
    # x_ref block: (H, W, tp)  -- fused N*C maps on lanes, W on sublanes.
    # o_ref block: (1, tp)
    H, W, _ = x_ref.shape
    n_lv = nlv_bcd - 1

    # Regression abscissa: compile-time Python scalars baked into the kernel.
    Xs = [-math.log(i + 2, 2) for i in range(n_lv)]
    meanX = sum(Xs) / n_lv
    inv_denom = 1.0 / sum((xv - meanX) ** 2 for xv in Xs)

    col_max = None          # incremental W-direction sliding max, reused
    ys = []
    for i in range(n_lv):
        k = i + 2           # MaxPool2d kernel size
        s = k // 2          # MaxPool2d stride
        Bc = W - k + 1      # dense (stride-1) sliding-window columns
        nh = (H - k) // s + 1   # pooled output rows (stride applied)

        # Extend the column-window max by one shifted slice read STRAIGHT
        # from the ref (vld slot has slack in a VALU-bound kernel); cast to
        # f32 on load so the compute path is exact for any input dtype.
        x_sh = x_ref[:, pl.ds(k - 1, Bc), :].astype(jnp.float32)
        if col_max is None:
            col_max = jnp.maximum(
                x_ref[:, pl.ds(0, Bc), :].astype(jnp.float32), x_sh)
        else:
            col_max = jnp.maximum(col_max[:, :Bc, :], x_sh)

        # H-direction window max FUSED with the pool stride: only the nh
        # strided output rows are computed, and they are summed on the fly.
        acc = None
        for r in range(nh):
            row = col_max[r * s]                    # (Bc, tp)
            for dh in range(1, k):
                row = jnp.maximum(row, col_max[r * s + dh])
            acc = row if acc is None else acc + row

        # W-direction stride: keep only columns that are multiples of s.
        # Select (not multiply-by-0/1) so NaN/inf in discarded positions
        # cannot pollute the sum.
        if s > 1:
            wi = lax.broadcasted_iota(jnp.int32, (Bc, 1), 0)
            acc = jnp.where(wi % s == 0, acc, 0.0)
        pooled = jnp.sum(acc, axis=0, keepdims=True)    # (1, tp)

        # log2(ReLU(sum) + 1)
        ys.append(jnp.log2(jnp.maximum(pooled, 0.0) + 1.0))

    # Least-squares slope of Y vs X across the n_lv levels (fractal dim).
    meanY = sum(ys) / n_lv
    num = sum((ys[i] - meanY) * (Xs[i] - meanX) for i in range(n_lv))
    o_ref[...] = num * inv_denom


def _vmem_limit_bytes():
    """Per-generation VMEM ceiling with ~8 MiB compiler headroom."""
    cap = None
    try:
        info = pltpu.get_tpu_info()
        cap = int(getattr(info, "vmem_capacity_bytes", 0)) or None
    except Exception:
        cap = None
    if cap is None:
        cap = 64 * 1024 * 1024      # conservative: v7x per-TensorCore VMEM
    return int(max(16 * 1024 * 1024,
                   min(cap - 8 * 1024 * 1024, 100 * 1024 * 1024)))


def _choose_tile(P, H, W, in_itemsize, vmem_limit):
    """Tile size along the fused N*C (lane) axis; always divides P."""
    per_lane_in = H * W * in_itemsize       # double-buffered input DMA block
    per_lane_f32 = H * W * 4                # col_max + transient ref slice
    per_lane_live = 2 * per_lane_in + 3 * per_lane_f32
    budget = (3 * vmem_limit) // 4
    max_tp = max(1, budget // per_lane_live)

    if P <= max_tp:
        # Whole problem fits one block.  If it is big enough for >=2
        # lane-dense blocks, split so both v7x TensorCores get work
        # (near-free on single-TC v5e/v6e: one extra ~0.35us grid step).
        if P >= 256 and P % 128 == 0:
            divs = [d for d in range(128, P // 2 + 1, 128) if P % d == 0]
            if divs:
                return max(divs)
        return P

    # Need tiling: tile must be a multiple of 128 (lane width) dividing P.
    divs128 = [d for d in range(128, P + 1, 128) if P % d == 0]
    if divs128:
        fits = [d for d in divs128 if d <= max_tp]
        return max(fits) if fits else min(divs128)

    # TODO(synk): P has no multiple-of-128 divisor and a full-P block exceeds
    # the soft budget -> would need H-tiling with a (k-1)-row halo; fall back
    # to the full block and rely on the raised vmem_limit.
    return P


def gdcb_forward(x, nlv_bcd=6):
    """x: (N, C, H, W) -> (N, C, 1, 1) float32 (matches PyTorch GDCB)."""
    N, C, H, W = x.shape
    assert nlv_bcd >= 3, "nlv_bcd must be >= 3 (regression needs >= 2 levels)"
    assert H >= nlv_bcd and W >= nlv_bcd, "spatial dims must be >= nlv_bcd"
    P = N * C

    # Single layout pass: (N, C, H, W) -> (H, W, N*C).  The fused N*C axis
    # rides the lanes so every (n, c) map is an independent lane column; the
    # dtype cast happens inside the kernel (no separate cast HBM sweep).
    xt = jnp.transpose(x.reshape(P, H, W), (1, 2, 0))

    vlim = _vmem_limit_bytes()
    tp = _choose_tile(P, H, W, jnp.dtype(x.dtype).itemsize, vlim)

    kernel = functools.partial(_gdcb_kernel, nlv_bcd=nlv_bcd)
    out = pl.pallas_call(
        kernel,
        out_shape=jax.ShapeDtypeStruct((1, P), jnp.float32),
        grid=(P // tp,),
        in_specs=[pl.BlockSpec((H, W, tp), lambda p: (0, 0, p))],
        out_specs=pl.BlockSpec((1, tp), lambda p: (0, p)),
        compiler_params=pltpu.CompilerParams(
            dimension_semantics=("parallel",),
            vmem_limit_bytes=vlim,
        ),
    )(xt)
    return out.reshape(N, C, 1, 1)   # free reshape to the PyTorch output shape


def gdcb_reference(x, nlv_bcd=6):
    """Pure-JAX reference mirroring the PyTorch forward (for verification)."""
    n_lv = nlv_bcd - 1
    feats = []
    for i in range(n_lv):
        k = i + 2
        s = k // 2
        pooled = lax.reduce_window(
            x, -jnp.inf, lax.max, (1, 1, k, k), (1, 1, s, s), "VALID")
        feats.append(jnp.sum(pooled, axis=(2, 3), keepdims=True))
    out = jnp.concatenate(feats, axis=2)                 # (N, C, n_lv, 1)
    out = jnp.log2(jax.nn.relu(out) + 1.0)
    Xc = jnp.array([-math.log(i + 2, 2) for i in range(n_lv)], jnp.float32)
    Xc = Xc.reshape(1, 1, n_lv, 1)
    meanX = jnp.mean(Xc, axis=2, keepdims=True)
    meanY = jnp.mean(out, axis=2, keepdims=True)
    return jnp.sum((out - meanY) * (Xc - meanX), axis=2, keepdims=True) / \
           jnp.sum((Xc - meanX) ** 2, axis=2, keepdims=True)


if __name__ == "__main__":
    key = jax.random.PRNGKey(0)
    x = jax.random.normal(key, (2, 4, 16, 16), dtype=jnp.float32)

    out = jax.block_until_ready(gdcb_forward(x))
    ref = jax.block_until_ready(gdcb_reference(x))

    assert out.shape == (2, 4, 1, 1), out.shape
    assert jnp.allclose(out, ref, rtol=1e-4, atol=1e-4), (out, ref)

    print("KERNEL_OK")
</pallas_src>

<mosaic_0001>
module attributes {stable_mosaic.version = 11 : i64} {
  func.func @_gdcb_kernel(%arg0: i32, %arg1: memref<16x16x8xf32, #tpu.memory_space<vmem>>, %arg2: memref<1x8xf32, #tpu.memory_space<vmem>>) attributes {dimension_semantics = [#tpu.dimension_semantics<parallel>], iteration_bounds = array<i64: 1>, scalar_prefetch = 0 : i64, scratch_operands = 0 : i64, tpu.core_type = #tpu.core_type<tc>, window_params = [{transform_indices = @transform_0, window_bounds = array<i64: 16, 16, 8>}, {transform_indices = @transform_1, window_bounds = array<i64: 1, 8>}]} {
    %c0 = arith.constant 0 : index
    %c1 = arith.constant 1 : index
    %c0_0 = arith.constant 0 : index
    %0 = vector.load %arg1[%c0, %c1, %c0_0] : memref<16x16x8xf32, #tpu.memory_space<vmem>>, vector<16x15x8xf32>
    %c0_1 = arith.constant 0 : index
    %c0_2 = arith.constant 0 : index
    %c0_3 = arith.constant 0 : index
    %1 = vector.load %arg1[%c0_1, %c0_2, %c0_3] : memref<16x16x8xf32, #tpu.memory_space<vmem>>, vector<16x15x8xf32>
    %2 = arith.maximumf %1, %0 : vector<16x15x8xf32>
    %3 = vector.extract_strided_slice %2 {offsets = [0, 0, 0], sizes = [1, 15, 8], strides = [1, 1, 1]} : vector<16x15x8xf32> to vector<1x15x8xf32>
    %4 = vector.shape_cast %3 : vector<1x15x8xf32> to vector<15x8xf32>
    %5 = vector.extract_strided_slice %2 {offsets = [1, 0, 0], sizes = [1, 15, 8], strides = [1, 1, 1]} : vector<16x15x8xf32> to vector<1x15x8xf32>
    %6 = vector.shape_cast %5 : vector<1x15x8xf32> to vector<15x8xf32>
    %7 = arith.maximumf %4, %6 : vector<15x8xf32>
    %8 = vector.extract_strided_slice %2 {offsets = [1, 0, 0], sizes = [1, 15, 8], strides = [1, 1, 1]} : vector<16x15x8xf32> to vector<1x15x8xf32>
    %9 = vector.shape_cast %8 : vector<1x15x8xf32> to vector<15x8xf32>
    %10 = vector.extract_strided_slice %2 {offsets = [2, 0, 0], sizes = [1, 15, 8], strides = [1, 1, 1]} : vector<16x15x8xf32> to vector<1x15x8xf32>
    %11 = vector.shape_cast %10 : vector<1x15x8xf32> to vector<15x8xf32>
    %12 = arith.maximumf %9, %11 : vector<15x8xf32>
    %13 = arith.addf %7, %12 : vector<15x8xf32>
    %14 = vector.extract_strided_slice %2 {offsets = [2, 0, 0], sizes = [1, 15, 8], strides = [1, 1, 1]} : vector<16x15x8xf32> to vector<1x15x8xf32>
    %15 = vector.shape_cast %14 : vector<1x15x8xf32> to vector<15x8xf32>
    %16 = vector.extract_strided_slice %2 {offsets = [3, 0, 0], sizes = [1, 15, 8], strides = [1, 1, 1]} : vector<16x15x8xf32> to vector<1x15x8xf32>
    %17 = vector.shape_cast %16 : vector<1x15x8xf32> to vector<15x8xf32>
    %18 = arith.maximumf %15, %17 : vector<15x8xf32>
    %19 = arith.addf %13, %18 : vector<15x8xf32>
    %20 = vector.extract_strided_slice %2 {offsets = [3, 0, 0], sizes = [1, 15, 8], strides = [1, 1, 1]} : vector<16x15x8xf32> to vector<1x15x8xf32>
    %21 = vector.shape_cast %20 : vector<1x15x8xf32> to vector<15x8xf32>
    %22 = vector.extract_strided_slice %2 {offsets = [4, 0, 0], sizes = [1, 15, 8], strides = [1, 1, 1]} : vector<16x15x8xf32> to vector<1x15x8xf32>
    %23 = vector.shape_cast %22 : vector<1x15x8xf32> to vector<15x8xf32>
    %24 = arith.maximumf %21, %23 : vector<15x8xf32>
    %25 = arith.addf %19, %24 : vector<15x8xf32>
    %26 = vector.extract_strided_slice %2 {offsets = [4, 0, 0], sizes = [1, 15, 8], strides = [1, 1, 1]} : vector<16x15x8xf32> to vector<1x15x8xf32>
    %27 = vector.shape_cast %26 : vector<1x15x8xf32> to vector<15x8xf32>
    %28 = vector.extract_strided_slice %2 {offsets = [5, 0, 0], sizes = [1, 15, 8], strides = [1, 1, 1]} : vector<16x15x8xf32> to vector<1x15x8xf32>
    %29 = vector.shape_cast %28 : vector<1x15x8xf32> to vector<15x8xf32>
    %30 = arith.maximumf %27, %29 : vector<15x8xf32>
    %31 = arith.addf %25, %30 : vector<15x8xf32>
    %32 = vector.extract_strided_slice %2 {offsets = [5, 0, 0], sizes = [1, 15, 8], strides = [1, 1, 1]} : vector<16x15x8xf32> to vector<1x15x8xf32>
    %33 = vector.shape_cast %32 : vector<1x15x8xf32> to vector<15x8xf32>
    %34 = vector.extract_strided_slice %2 {offsets = [6, 0, 0], sizes = [1, 15, 8], strides = [1, 1, 1]} : vector<16x15x8xf32> to vector<1x15x8xf32>
    %35 = vector.shape_cast %34 : vector<1x15x8xf32> to vector<15x8xf32>
    %36 = arith.maximumf %33, %35 : vector<15x8xf32>
    %37 = arith.addf %31, %36 : vector<15x8xf32>
    %38 = vector.extract_strided_slice %2 {offsets = [6, 0, 0], sizes = [1, 15, 8], strides = [1, 1, 1]} : vector<16x15x8xf32> to vector<1x15x8xf32>
    %39 = vector.shape_cast %38 : vector<1x15x8xf32> to vector<15x8xf32>
    %40 = vector.extract_strided_slice %2 {offsets = [7, 0, 0], sizes = [1, 15, 8], strides = [1, 1, 1]} : vector<16x15x8xf32> to vector<1x15x8xf32>
    %41 = vector.shape_cast %40 : vector<1x15x8xf32> to vector<15x8xf32>
    %42 = arith.maximumf %39, %41 : vector<15x8xf32>
    %43 = arith.addf %37, %42 : vector<15x8xf32>
    %44 = vector.extract_strided_slice %2 {offsets = [7, 0, 0], sizes = [1, 15, 8], strides = [1, 1, 1]} : vector<16x15x8xf32> to vector<1x15x8xf32>
    %45 = vector.shape_cast %44 : vector<1x15x8xf32> to vector<15x8xf32>
    %46 = vector.extract_strided_slice %2 {offsets = [8, 0, 0], sizes = [1, 15, 8], strides = [1, 1, 1]} : vector<16x15x8xf32> to vector<1x15x8xf32>
    %47 = vector.shape_cast %46 : vector<1x15x8xf32> to vector<15x8xf32>
    %48 = arith.maximumf %45, %47 : vector<15x8xf32>
    %49 = arith.addf %43, %48 : vector<15x8xf32>
    %50 = vector.extract_strided_slice %2 {offsets = [8, 0, 0], sizes = [1, 15, 8], strides = [1, 1, 1]} : vector<16x15x8xf32> to vector<1x15x8xf32>
    %51 = vector.shape_cast %50 : vector<1x15x8xf32> to vector<15x8xf32>
    %52 = vector.extract_strided_slice %2 {offsets = [9, 0, 0], sizes = [1, 15, 8], strides = [1, 1, 1]} : vector<16x15x8xf32> to vector<1x15x8xf32>
    %53 = vector.shape_cast %52 : vector<1x15x8xf32> to vector<15x8xf32>
    %54 = arith.maximumf %51, %53 : vector<15x8xf32>
    %55 = arith.addf %49, %54 : vector<15x8xf32>
    %56 = vector.extract_strided_slice %2 {offsets = [9, 0, 0], sizes = [1, 15, 8], strides = [1, 1, 1]} : vector<16x15x8xf32> to vector<1x15x8xf32>
    %57 = vector.shape_cast %56 : vector<1x15x8xf32> to vector<15x8xf32>
    %58 = vector.extract_strided_slice %2 {offsets = [10, 0, 0], sizes = [1, 15, 8], strides = [1, 1, 1]} : vector<16x15x8xf32> to vector<1x15x8xf32>
    %59 = vector.shape_cast %58 : vector<1x15x8xf32> to vector<15x8xf32>
    %60 = arith.maximumf %57, %59 : vector<15x8xf32>
    %61 = arith.addf %55, %60 : vector<15x8xf32>
    %62 = vector.extract_strided_slice %2 {offsets = [10, 0, 0], sizes = [1, 15, 8], strides = [1, 1, 1]} : vector<16x15x8xf32> to vector<1x15x8xf32>
    %63 = vector.shape_cast %62 : vector<1x15x8xf32> to vector<15x8xf32>
    %64 = vector.extract_strided_slice %2 {offsets = [11, 0, 0], sizes = [1, 15, 8], strides = [1, 1, 1]} : vector<16x15x8xf32> to vector<1x15x8xf32>
    %65 = vector.shape_cast %64 : vector<1x15x8xf32> to vector<15x8xf32>
    %66 = arith.maximumf %63, %65 : vector<15x8xf32>
    %67 = arith.addf %61, %66 : vector<15x8xf32>
    %68 = vector.extract_strided_slice %2 {offsets = [11, 0, 0], sizes = [1, 15, 8], strides = [1, 1, 1]} : vector<16x15x8xf32> to vector<1x15x8xf32>
    %69 = vector.shape_cast %68 : vector<1x15x8xf32> to vector<15x8xf32>
    %70 = vector.extract_strided_slice %2 {offsets = [12, 0, 0], sizes = [1, 15, 8], strides = [1, 1, 1]} : vector<16x15x8xf32> to vector<1x15x8xf32>
    %71 = vector.shape_cast %70 : vector<1x15x8xf32> to vector<15x8xf32>
    %72 = arith.maximumf %69, %71 : vector<15x8xf32>
    %73 = arith.addf %67, %72 : vector<15x8xf32>
    %74 = vector.extract_strided_slice %2 {offsets = [12, 0, 0], sizes = [1, 15, 8], strides = [1, 1, 1]} : vector<16x15x8xf32> to vector<1x15x8xf32>
    %75 = vector.shape_cast %74 : vector<1x15x8xf32> to vector<15x8xf32>
    %76 = vector.extract_strided_slice %2 {offsets = [13, 0, 0], sizes = [1, 15, 8], strides = [1, 1, 1]} : vector<16x15x8xf32> to vector<1x15x8xf32>
    %77 = vector.shape_cast %76 : vector<1x15x8xf32> to vector<15x8xf32>
    %78 = arith.maximumf %75, %77 : vector<15x8xf32>
    %79 = arith.addf %73, %78 : vector<15x8xf32>
    %80 = vector.extract_strided_slice %2 {offsets = [13, 0, 0], sizes = [1, 15, 8], strides = [1, 1, 1]} : vector<16x15x8xf32> to vector<1x15x8xf32>
    %81 = vector.shape_cast %80 : vector<1x15x8xf32> to vector<15x8xf32>
    %82 = vector.extract_strided_slice %2 {offsets = [14, 0, 0], sizes = [1, 15, 8], strides = [1, 1, 1]} : vector<16x15x8xf32> to vector<1x15x8xf32>
    %83 = vector.shape_cast %82 : vector<1x15x8xf32> to vector<15x8xf32>
    %84 = arith.maximumf %81, %83 : vector<15x8xf32>
    %85 = arith.addf %79, %84 : vector<15x8xf32>
    %86 = vector.extract_strided_slice %2 {offsets = [14, 0, 0], sizes = [1, 15, 8], strides = [1, 1, 1]} : vector<16x15x8xf32> to vector<1x15x8xf32>
    %87 = vector.shape_cast %86 : vector<1x15x8xf32> to vector<15x8xf32>
    %88 = vector.extract_strided_slice %2 {offsets = [15, 0, 0], sizes = [1, 15, 8], strides = [1, 1, 1]} : vector<16x15x8xf32> to vector<1x15x8xf32>
    %89 = vector.shape_cast %88 : vector<1x15x8xf32> to vector<15x8xf32>
    %90 = arith.maximumf %87, %89 : vector<15x8xf32>
    %91 = arith.addf %85, %90 : vector<15x8xf32>
    %cst = arith.constant dense<0.000000e+00> : vector<8xf32>
    %92 = vector.multi_reduction <add>, %91, %cst [0] : vector<15x8xf32> to vector<8xf32>
    %93 = vector.shape_cast %92 : vector<8xf32> to vector<1x8xf32>
    %cst_4 = arith.constant 0.000000e+00 : f32
    %94 = vector.broadcast %cst_4 : f32 to vector<1x8xf32>
    %95 = arith.maximumf %93, %94 : vector<1x8xf32>
    %cst_5 = arith.constant 1.000000e+00 : f32
    %96 = vector.broadcast %cst_5 : f32 to vector<1x8xf32>
    %97 = arith.addf %95, %96 : vector<1x8xf32>
    %98 = math.log %97 : vector<1x8xf32>
    %cst_6 = arith.constant 2.000000e+00 : f32
    %99 = math.log %cst_6 : f32
    %100 = vector.broadcast %99 : f32 to vector<1x8xf32>
    %101 = arith.divf %98, %100 : vector<1x8xf32>
    %c0_7 = arith.constant 0 : index
    %c2 = arith.constant 2 : index
    %c0_8 = arith.constant 0 : index
    %102 = vector.load %arg1[%c0_7, %c2, %c0_8] : memref<16x16x8xf32, #tpu.memory_space<vmem>>, vector<16x14x8xf32>
    %103 = vector.extract_strided_slice %2 {offsets = [0, 0, 0], sizes = [16, 14, 8], strides = [1, 1, 1]} : vector<16x15x8xf32> to vector<16x14x8xf32>
    %104 = arith.maximumf %103, %102 : vector<16x14x8xf32>
    %105 = vector.extract_strided_slice %104 {offsets = [0, 0, 0], sizes = [1, 14, 8], strides = [1, 1, 1]} : vector<16x14x8xf32> to vector<1x14x8xf32>
    %106 = vector.shape_cast %105 : vector<1x14x8xf32> to vector<14x8xf32>
    %107 = vector.extract_strided_slice %104 {offsets = [1, 0, 0], sizes = [1, 14, 8], strides = [1, 1, 1]} : vector<16x14x8xf32> to vector<1x14x8xf32>
    %108 = vector.shape_cast %107 : vector<1x14x8xf32> to vector<14x8xf32>
    %109 = arith.maximumf %106, %108 : vector<14x8xf32>
    %110 = vector.extract_strided_slice %104 {offsets = [2, 0, 0], sizes = [1, 14, 8], strides = [1, 1, 1]} : vector<16x14x8xf32> to vector<1x14x8xf32>
    %111 = vector.shape_cast %110 : vector<1x14x8xf32> to vector<14x8xf32>
    %112 = arith.maximumf %109, %111 : vector<14x8xf32>
    %113 = vector.extract_strided_slice %104 {offsets = [1, 0, 0], sizes = [1, 14, 8], strides = [1, 1, 1]} : vector<16x14x8xf32> to vector<1x14x8xf32>
    %114 = vector.shape_cast %113 : vector<1x14x8xf32> to vector<14x8xf32>
    %115 = vector.extract_strided_slice %104 {offsets = [2, 0, 0], sizes = [1, 14, 8], strides = [1, 1, 1]} : vector<16x14x8xf32> to vector<1x14x8xf32>
    %116 = vector.shape_cast %115 : vector<1x14x8xf32> to vector<14x8xf32>
    %117 = arith.maximumf %114, %116 : vector<14x8xf32>
    %118 = vector.extract_strided_slice %104 {offsets = [3, 0, 0], sizes = [1, 14, 8], strides = [1, 1, 1]} : vector<16x14x8xf32> to vector<1x14x8xf32>
    %119 = vector.shape_cast %118 : vector<1x14x8xf32> to vector<14x8xf32>
    %120 = arith.maximumf %117, %119 : vector<14x8xf32>
    %121 = arith.addf %112, %120 : vector<14x8xf32>
    %122 = vector.extract_strided_slice %104 {offsets = [2, 0, 0], sizes = [1, 14, 8], strides = [1, 1, 1]} : vector<16x14x8xf32> to vector<1x14x8xf32>
    %123 = vector.shape_cast %122 : vector<1x14x8xf32> to vector<14x8xf32>
    %124 = vector.extract_strided_slice %104 {offsets = [3, 0, 0], sizes = [1, 14, 8], strides = [1, 1, 1]} : vector<16x14x8xf32> to vector<1x14x8xf32>
    %125 = vector.shape_cast %124 : vector<1x14x8xf32> to vector<14x8xf32>
    %126 = arith.maximumf %123, %125 : vector<14x8xf32>
    %127 = vector.extract_strided_slice %104 {offsets = [4, 0, 0], sizes = [1, 14, 8], strides = [1, 1, 1]} : vector<16x14x8xf32> to vector<1x14x8xf32>
    %128 = vector.shape_cast %127 : vector<1x14x8xf32> to vector<14x8xf32>
    %129 = arith.maximumf %126, %128 : vector<14x8xf32>
    %130 = arith.addf %121, %129 : vector<14x8xf32>
    %131 = vector.extract_strided_slice %104 {offsets = [3, 0, 0], sizes = [1, 14, 8], strides = [1, 1, 1]} : vector<16x14x8xf32> to vector<1x14x8xf32>
    %132 = vector.shape_cast %131 : vector<1x14x8xf32> to vector<14x8xf32>
    %133 = vector.extract_strided_slice %104 {offsets = [4, 0, 0], sizes = [1, 14, 8], strides = [1, 1, 1]} : vector<16x14x8xf32> to vector<1x14x8xf32>
    %134 = vector.shape_cast %133 : vector<1x14x8xf32> to vector<14x8xf32>
    %135 = arith.maximumf %132, %134 : vector<14x8xf32>
    %136 = vector.extract_strided_slice %104 {offsets = [5, 0, 0], sizes = [1, 14, 8], strides = [1, 1, 1]} : vector<16x14x8xf32> to vector<1x14x8xf32>
    %137 = vector.shape_cast %136 : vector<1x14x8xf32> to vector<14x8xf32>
    %138 = arith.maximumf %135, %137 : vector<14x8xf32>
    %139 = arith.addf %130, %138 : vector<14x8xf32>
    %140 = vector.extract_strided_slice %104 {offsets = [4, 0, 0], sizes = [1, 14, 8], strides = [1, 1, 1]} : vector<16x14x8xf32> to vector<1x14x8xf32>
    %141 = vector.shape_cast %140 : vector<1x14x8xf32> to vector<14x8xf32>
    %142 = vector.extract_strided_slice %104 {offsets = [5, 0, 0], sizes = [1, 14, 8], strides = [1, 1, 1]} : vector<16x14x8xf32> to vector<1x14x8xf32>
    %143 = vector.shape_cast %142 : vector<1x14x8xf32> to vector<14x8xf32>
    %144 = arith.maximumf %141, %143 : vector<14x8xf32>
    %145 = vector.extract_strided_slice %104 {offsets = [6, 0, 0], sizes = [1, 14, 8], strides = [1, 1, 1]} : vector<16x14x8xf32> to vector<1x14x8xf32>
    %146 = vector.shape_cast %145 : vector<1x14x8xf32> to vector<14x8xf32>
    %147 = arith.maximumf %144, %146 : vector<14x8xf32>
    %148 = arith.addf %139, %147 : vector<14x8xf32>
    %149 = vector.extract_strided_slice %104 {offsets = [5, 0, 0], sizes = [1, 14, 8], strides = [1, 1, 1]} : vector<16x14x8xf32> to vector<1x14x8xf32>
    %150 = vector.shape_cast %149 : vector<1x14x8xf32> to vector<14x8xf32>
    %151 = vector.extract_strided_slice %104 {offsets = [6, 0, 0], sizes = [1, 14, 8], strides = [1, 1, 1]} : vector<16x14x8xf32> to vector<1x14x8xf32>
    %152 = vector.shape_cast %151 : vector<1x14x8xf32> to vector<14x8xf32>
    %153 = arith.maximumf %150, %152 : vector<14x8xf32>
    %154 = vector.extract_strided_slice %104 {offsets = [7, 0, 0], sizes = [1, 14, 8], strides = [1, 1, 1]} : vector<16x14x8xf32> to vector<1x14x8xf32>
    %155 = vector.shape_cast %154 : vector<1x14x8xf32> to vector<14x8xf32>
    %156 = arith.maximumf %153, %155 : vector<14x8xf32>
    %157 = arith.addf %148, %156 : vector<14x8xf32>
    %158 = vector.extract_strided_slice %104 {offsets = [6, 0, 0], sizes = [1, 14, 8], strides = [1, 1, 1]} : vector<16x14x8xf32> to vector<1x14x8xf32>
    %159 = vector.shape_cast %158 : vector<1x14x8xf32> to vector<14x8xf32>
    %160 = vector.extract_strided_slice %104 {offsets = [7, 0, 0], sizes = [1, 14, 8], strides = [1, 1, 1]} : vector<16x14x8xf32> to vector<1x14x8xf32>
    %161 = vector.shape_cast %160 : vector<1x14x8xf32> to vector<14x8xf32>
    %162 = arith.maximumf %159, %161 : vector<14x8xf32>
    %163 = vector.extract_strided_slice %104 {offsets = [8, 0, 0], sizes = [1, 14, 8], strides = [1, 1, 1]} : vector<16x14x8xf32> to vector<1x14x8xf32>
    %164 = vector.shape_cast %163 : vector<1x14x8xf32> to vector<14x8xf32>
    %165 = arith.maximumf %162, %164 : vector<14x8xf32>
    %166 = arith.addf %157, %165 : vector<14x8xf32>
    %167 = vector.extract_strided_slice %104 {offsets = [7, 0, 0], sizes = [1, 14, 8], strides = [1, 1, 1]} : vector<16x14x8xf32> to vector<1x14x8xf32>
    %168 = vector.shape_cast %167 : vector<1x14x8xf32> to vector<14x8xf32>
    %169 = vector.extract_strided_slice %104 {offsets = [8, 0, 0], sizes = [1, 14, 8], strides = [1, 1, 1]} : vector<16x14x8xf32> to vector<1x14x8xf32>
    %170 = vector.shape_cast %169 : vector<1x14x8xf32> to vector<14x8xf32>
    %171 = arith.maximumf %168, %170 : vector<14x8xf32>
    %172 = vector.extract_strided_slice %104 {offsets = [9, 0, 0], sizes = [1, 14, 8], strides = [1, 1, 1]} : vector<16x14x8xf32> to vector<1x14x8xf32>
    %173 = vector.shape_cast %172 : vector<1x14x8xf32> to vector<14x8xf32>
    %174 = arith.maximumf %171, %173 : vector<14x8xf32>
    %175 = arith.addf %166, %174 : vector<14x8xf32>
    %176 = vector.extract_strided_slice %104 {offsets = [8, 0, 0], sizes = [1, 14, 8], strides = [1, 1, 1]} : vector<16x14x8xf32> to vector<1x14x8xf32>
    %177 = vector.shape_cast %176 : vector<1x14x8xf32> to vector<14x8xf32>
    %178 = vector.extract_strided_slice %104 {offsets = [9, 0, 0], sizes = [1, 14, 8], strides = [1, 1, 1]} : vector<16x14x8xf32> to vector<1x14x8xf32>
    %179 = vector.shape_cast %178 : vector<1x14x8xf32> to vector<14x8xf32>
    %180 = arith.maximumf %177, %179 : vector<14x8xf32>
    %181 = vector.extract_strided_slice %104 {offsets = [10, 0, 0], sizes = [1, 14, 8], strides = [1, 1, 1]} : vector<16x14x8xf32> to vector<1x14x8xf32>
    %182 = vector.shape_cast %181 : vector<1x14x8xf32> to vector<14x8xf32>
    %183 = arith.maximumf %180, %182 : vector<14x8xf32>
    %184 = arith.addf %175, %183 : vector<14x8xf32>
    %185 = vector.extract_strided_slice %104 {offsets = [9, 0, 0], sizes = [1, 14, 8], strides = [1, 1, 1]} : vector<16x14x8xf32> to vector<1x14x8xf32>
    %186 = vector.shape_cast %185 : vector<1x14x8xf32> to vector<14x8xf32>
    %187 = vector.extract_strided_slice %104 {offsets = [10, 0, 0], sizes = [1, 14, 8], strides = [1, 1, 1]} : vector<16x14x8xf32> to vector<1x14x8xf32>
    %188 = vector.shape_cast %187 : vector<1x14x8xf32> to vector<14x8xf32>
    %189 = arith.maximumf %186, %188 : vector<14x8xf32>
    %190 = vector.extract_strided_slice %104 {offsets = [11, 0, 0], sizes = [1, 14, 8], strides = [1, 1, 1]} : vector<16x14x8xf32> to vector<1x14x8xf32>
    %191 = vector.shape_cast %190 : vector<1x14x8xf32> to vector<14x8xf32>
    %192 = arith.maximumf %189, %191 : vector<14x8xf32>
    %193 = arith.addf %184, %192 : vector<14x8xf32>
    %194 = vector.extract_strided_slice %104 {offsets = [10, 0, 0], sizes = [1, 14, 8], strides = [1, 1, 1]} : vector<16x14x8xf32> to vector<1x14x8xf32>
    %195 = vector.shape_cast %194 : vector<1x14x8xf32> to vector<14x8xf32>
    %196 = vector.extract_strided_slice %104 {offsets = [11, 0, 0], sizes = [1, 14, 8], strides = [1, 1, 1]} : vector<16x14x8xf32> to vector<1x14x8xf32>
    %197 = vector.shape_cast %196 : vector<1x14x8xf32> to vector<14x8xf32>
    %198 = arith.maximumf %195, %197 : vector<14x8xf32>
    %199 = vector.extract_strided_slice %104 {offsets = [12, 0, 0], sizes = [1, 14, 8], strides = [1, 1, 1]} : vector<16x14x8xf32> to vector<1x14x8xf32>
    %200 = vector.shape_cast %199 : vector<1x14x8xf32> to vector<14x8xf32>
    %201 = arith.maximumf %198, %200 : vector<14x8xf32>
    %202 = arith.addf %193, %201 : vector<14x8xf32>
    %203 = vector.extract_strided_slice %104 {offsets = [11, 0, 0], sizes = [1, 14, 8], strides = [1, 1, 1]} : vector<16x14x8xf32> to vector<1x14x8xf32>
    %204 = vector.shape_cast %203 : vector<1x14x8xf32> to vector<14x8xf32>
    %205 = vector.extract_strided_slice %104 {offsets = [12, 0, 0], sizes = [1, 14, 8], strides = [1, 1, 1]} : vector<16x14x8xf32> to vector<1x14x8xf32>
    %206 = vector.shape_cast %205 : vector<1x14x8xf32> to vector<14x8xf32>
    %207 = arith.maximumf %204, %206 : vector<14x8xf32>
    %208 = vector.extract_strided_slice %104 {offsets = [13, 0, 0], sizes = [1, 14, 8], strides = [1, 1, 1]} : vector<16x14x8xf32> to vector<1x14x8xf32>
    %209 = vector.shape_cast %208 : vector<1x14x8xf32> to vector<14x8xf32>
    %210 = arith.maximumf %207, %209 : vector<14x8xf32>
    %211 = arith.addf %202, %210 : vector<14x8xf32>
    %212 = vector.extract_strided_slice %104 {offsets = [12, 0, 0], sizes = [1, 14, 8], strides = [1, 1, 1]} : vector<16x14x8xf32> to vector<1x14x8xf32>
    %213 = vector.shape_cast %212 : vector<1x14x8xf32> to vector<14x8xf32>
    %214 = vector.extract_strided_slice %104 {offsets = [13, 0, 0], sizes = [1, 14, 8], strides = [1, 1, 1]} : vector<16x14x8xf32> to vector<1x14x8xf32>
    %215 = vector.shape_cast %214 : vector<1x14x8xf32> to vector<14x8xf32>
    %216 = arith.maximumf %213, %215 : vector<14x8xf32>
    %217 = vector.extract_strided_slice %104 {offsets = [14, 0, 0], sizes = [1, 14, 8], strides = [1, 1, 1]} : vector<16x14x8xf32> to vector<1x14x8xf32>
    %218 = vector.shape_cast %217 : vector<1x14x8xf32> to vector<14x8xf32>
    %219 = arith.maximumf %216, %218 : vector<14x8xf32>
    %220 = arith.addf %211, %219 : vector<14x8xf32>
    %221 = vector.extract_strided_slice %104 {offsets = [13, 0, 0], sizes = [1, 14, 8], strides = [1, 1, 1]} : vector<16x14x8xf32> to vector<1x14x8xf32>
    %222 = vector.shape_cast %221 : vector<1x14x8xf32> to vector<14x8xf32>
    %223 = vector.extract_strided_slice %104 {offsets = [14, 0, 0], sizes = [1, 14, 8], strides = [1, 1, 1]} : vector<16x14x8xf32> to vector<1x14x8xf32>
    %224 = vector.shape_cast %223 : vector<1x14x8xf32> to vector<14x8xf32>
    %225 = arith.maximumf %222, %224 : vector<14x8xf32>
    %226 = vector.extract_strided_slice %104 {offsets = [15, 0, 0], sizes = [1, 14, 8], strides = [1, 1, 1]} : vector<16x14x8xf32> to vector<1x14x8xf32>
    %227 = vector.shape_cast %226 : vector<1x14x8xf32> to vector<14x8xf32>
    %228 = arith.maximumf %225, %227 : vector<14x8xf32>
    %229 = arith.addf %220, %228 : vector<14x8xf32>
    %cst_9 = arith.constant dense<0.000000e+00> : vector<8xf32>
    %230 = vector.multi_reduction <add>, %229, %cst_9 [0] : vector<14x8xf32> to vector<8xf32>
    %231 = vector.shape_cast %230 : vector<8xf32> to vector<1x8xf32>
    %cst_10 = arith.constant 0.000000e+00 : f32
    %232 = vector.broadcast %cst_10 : f32 to vector<1x8xf32>
    %233 = arith.maximumf %231, %232 : vector<1x8xf32>
    %cst_11 = arith.constant 1.000000e+00 : f32
    %234 = vector.broadcast %cst_11 : f32 to vector<1x8xf32>
    %235 = arith.addf %233, %234 : vector<1x8xf32>
    %236 = math.log %235 : vector<1x8xf32>
    %cst_12 = arith.constant 2.000000e+00 : f32
    %237 = math.log %cst_12 : f32
    %238 = vector.broadcast %237 : f32 to vector<1x8xf32>
    %239 = arith.divf %236, %238 : vector<1x8xf32>
    %c0_13 = arith.constant 0 : index
    %c3 = arith.constant 3 : index
    %c0_14 = arith.constant 0 : index
    %240 = vector.load %arg1[%c0_13, %c3, %c0_14] : memref<16x16x8xf32, #tpu.memory_space<vmem>>, vector<16x13x8xf32>
    %241 = vector.extract_strided_slice %104 {offsets = [0, 0, 0], sizes = [16, 13, 8], strides = [1, 1, 1]} : vector<16x14x8xf32> to vector<16x13x8xf32>
    %242 = arith.maximumf %241, %240 : vector<16x13x8xf32>
    %243 = vector.extract_strided_slice %242 {offsets = [0, 0, 0], sizes = [1, 13, 8], strides = [1, 1, 1]} : vector<16x13x8xf32> to vector<1x13x8xf32>
    %244 = vector.shape_cast %243 : vector<1x13x8xf32> to vector<13x8xf32>
    %245 = vector.extract_strided_slice %242 {offsets = [1, 0, 0], sizes = [1, 13, 8], strides = [1, 1, 1]} : vector<16x13x8xf32> to vector<1x13x8xf32>
    %246 = vector.shape_cast %245 : vector<1x13x8xf32> to vector<13x8xf32>
    %247 = arith.maximumf %244, %246 : vector<13x8xf32>
    %248 = vector.extract_strided_slice %242 {offsets = [2, 0, 0], sizes = [1, 13, 8], strides = [1, 1, 1]} : vector<16x13x8xf32> to vector<1x13x8xf32>
    %249 = vector.shape_cast %248 : vector<1x13x8xf32> to vector<13x8xf32>
    %250 = arith.maximumf %247, %249 : vector<13x8xf32>
    %251 = vector.extract_strided_slice %242 {offsets = [3, 0, 0], sizes = [1, 13, 8], strides = [1, 1, 1]} : vector<16x13x8xf32> to vector<1x13x8xf32>
    %252 = vector.shape_cast %251 : vector<1x13x8xf32> to vector<13x8xf32>
    %253 = arith.maximumf %250, %252 : vector<13x8xf32>
    %254 = vector.extract_strided_slice %242 {offsets = [2, 0, 0], sizes = [1, 13, 8], strides = [1, 1, 1]} : vector<16x13x8xf32> to vector<1x13x8xf32>
    %255 = vector.shape_cast %254 : vector<1x13x8xf32> to vector<13x8xf32>
    %256 = vector.extract_strided_slice %242 {offsets = [3, 0, 0], sizes = [1, 13, 8], strides = [1, 1, 1]} : vector<16x13x8xf32> to vector<1x13x8xf32>
    %257 = vector.shape_cast %256 : vector<1x13x8xf32> to vector<13x8xf32>
    %258 = arith.maximumf %255, %257 : vector<13x8xf32>
    %259 = vector.extract_strided_slice %242 {offsets = [4, 0, 0], sizes = [1, 13, 8], strides = [1, 1, 1]} : vector<16x13x8xf32> to vector<1x13x8xf32>
    %260 = vector.shape_cast %259 : vector<1x13x8xf32> to vector<13x8xf32>
    %261 = arith.maximumf %258, %260 : vector<13x8xf32>
    %262 = vector.extract_strided_slice %242 {offsets = [5, 0, 0], sizes = [1, 13, 8], strides = [1, 1, 1]} : vector<16x13x8xf32> to vector<1x13x8xf32>
    %263 = vector.shape_cast %262 : vector<1x13x8xf32> to vector<13x8xf32>
    %264 = arith.maximumf %261, %263 : vector<13x8xf32>
    %265 = arith.addf %253, %264 : vector<13x8xf32>
    %266 = vector.extract_strided_slice %242 {offsets = [4, 0, 0], sizes = [1, 13, 8], strides = [1, 1, 1]} : vector<16x13x8xf32> to vector<1x13x8xf32>
    %267 = vector.shape_cast %266 : vector<1x13x8xf32> to vector<13x8xf32>
    %268 = vector.extract_strided_slice %242 {offsets = [5, 0, 0], sizes = [1, 13, 8], strides = [1, 1, 1]} : vector<16x13x8xf32> to vector<1x13x8xf32>
    %269 = vector.shape_cast %268 : vector<1x13x8xf32> to vector<13x8xf32>
    %270 = arith.maximumf %267, %269 : vector<13x8xf32>
    %271 = vector.extract_strided_slice %242 {offsets = [6, 0, 0], sizes = [1, 13, 8], strides = [1, 1, 1]} : vector<16x13x8xf32> to vector<1x13x8xf32>
    %272 = vector.shape_cast %271 : vector<1x13x8xf32> to vector<13x8xf32>
    %273 = arith.maximumf %270, %272 : vector<13x8xf32>
    %274 = vector.extract_strided_slice %242 {offsets = [7, 0, 0], sizes = [1, 13, 8], strides = [1, 1, 1]} : vector<16x13x8xf32> to vector<1x13x8xf32>
    %275 = vector.shape_cast %274 : vector<1x13x8xf32> to vector<13x8xf32>
    %276 = arith.maximumf %273, %275 : vector<13x8xf32>
    %277 = arith.addf %265, %276 : vector<13x8xf32>
    %278 = vector.extract_strided_slice %242 {offsets = [6, 0, 0], sizes = [1, 13, 8], strides = [1, 1, 1]} : vector<16x13x8xf32> to vector<1x13x8xf32>
    %279 = vector.shape_cast %278 : vector<1x13x8xf32> to vector<13x8xf32>
    %280 = vector.extract_strided_slice %242 {offsets = [7, 0, 0], sizes = [1, 13, 8], strides = [1, 1, 1]} : vector<16x13x8xf32> to vector<1x13x8xf32>
    %281 = vector.shape_cast %280 : vector<1x13x8xf32> to vector<13x8xf32>
    %282 = arith.maximumf %279, %281 : vector<13x8xf32>
    %283 = vector.extract_strided_slice %242 {offsets = [8, 0, 0], sizes = [1, 13, 8], strides = [1, 1, 1]} : vector<16x13x8xf32> to vector<1x13x8xf32>
    %284 = vector.shape_cast %283 : vector<1x13x8xf32> to vector<13x8xf32>
    %285 = arith.maximumf %282, %284 : vector<13x8xf32>
    %286 = vector.extract_strided_slice %242 {offsets = [9, 0, 0], sizes = [1, 13, 8], strides = [1, 1, 1]} : vector<16x13x8xf32> to vector<1x13x8xf32>
    %287 = vector.shape_cast %286 : vector<1x13x8xf32> to vector<13x8xf32>
    %288 = arith.maximumf %285, %287 : vector<13x8xf32>
    %289 = arith.addf %277, %288 : vector<13x8xf32>
    %290 = vector.extract_strided_slice %242 {offsets = [8, 0, 0], sizes = [1, 13, 8], strides = [1, 1, 1]} : vector<16x13x8xf32> to vector<1x13x8xf32>
    %291 = vector.shape_cast %290 : vector<1x13x8xf32> to vector<13x8xf32>
    %292 = vector.extract_strided_slice %242 {offsets = [9, 0, 0], sizes = [1, 13, 8], strides = [1, 1, 1]} : vector<16x13x8xf32> to vector<1x13x8xf32>
    %293 = vector.shape_cast %292 : vector<1x13x8xf32> to vector<13x8xf32>
    %294 = arith.maximumf %291, %293 : vector<13x8xf32>
    %295 = vector.extract_strided_slice %242 {offsets = [10, 0, 0], sizes = [1, 13, 8], strides = [1, 1, 1]} : vector<16x13x8xf32> to vector<1x13x8xf32>
    %296 = vector.shape_cast %295 : vector<1x13x8xf32> to vector<13x8xf32>
    %297 = arith.maximumf %294, %296 : vector<13x8xf32>
    %298 = vector.extract_strided_slice %242 {offsets = [11, 0, 0], sizes = [1, 13, 8], strides = [1, 1, 1]} : vector<16x13x8xf32> to vector<1x13x8xf32>
    %299 = vector.shape_cast %298 : vector<1x13x8xf32> to vector<13x8xf32>
    %300 = arith.maximumf %297, %299 : vector<13x8xf32>
    %301 = arith.addf %289, %300 : vector<13x8xf32>
    %302 = vector.extract_strided_slice %242 {offsets = [10, 0, 0], sizes = [1, 13, 8], strides = [1, 1, 1]} : vector<16x13x8xf32> to vector<1x13x8xf32>
    %303 = vector.shape_cast %302 : vector<1x13x8xf32> to vector<13x8xf32>
    %304 = vector.extract_strided_slice %242 {offsets = [11, 0, 0], sizes = [1, 13, 8], strides = [1, 1, 1]} : vector<16x13x8xf32> to vector<1x13x8xf32>
    %305 = vector.shape_cast %304 : vector<1x13x8xf32> to vector<13x8xf32>
    %306 = arith.maximumf %303, %305 : vector<13x8xf32>
    %307 = vector.extract_strided_slice %242 {offsets = [12, 0, 0], sizes = [1, 13, 8], strides = [1, 1, 1]} : vector<16x13x8xf32> to vector<1x13x8xf32>
    %308 = vector.shape_cast %307 : vector<1x13x8xf32> to vector<13x8xf32>
    %309 = arith.maximumf %306, %308 : vector<13x8xf32>
    %310 = vector.extract_strided_slice %242 {offsets = [13, 0, 0], sizes = [1, 13, 8], strides = [1, 1, 1]} : vector<16x13x8xf32> to vector<1x13x8xf32>
    %311 = vector.shape_cast %310 : vector<1x13x8xf32> to vector<13x8xf32>
    %312 = arith.maximumf %309, %311 : vector<13x8xf32>
    %313 = arith.addf %301, %312 : vector<13x8xf32>
    %314 = vector.extract_strided_slice %242 {offsets = [12, 0, 0], sizes = [1, 13, 8], strides = [1, 1, 1]} : vector<16x13x8xf32> to vector<1x13x8xf32>
    %315 = vector.shape_cast %314 : vector<1x13x8xf32> to vector<13x8xf32>
    %316 = vector.extract_strided_slice %242 {offsets = [13, 0, 0], sizes = [1, 13, 8], strides = [1, 1, 1]} : vector<16x13x8xf32> to vector<1x13x8xf32>
    %317 = vector.shape_cast %316 : vector<1x13x8xf32> to vector<13x8xf32>
    %318 = arith.maximumf %315, %317 : vector<13x8xf32>
    %319 = vector.extract_strided_slice %242 {offsets = [14, 0, 0], sizes = [1, 13, 8], strides = [1, 1, 1]} : vector<16x13x8xf32> to vector<1x13x8xf32>
    %320 = vector.shape_cast %319 : vector<1x13x8xf32> to vector<13x8xf32>
    %321 = arith.maximumf %318, %320 : vector<13x8xf32>
    %322 = vector.extract_strided_slice %242 {offsets = [15, 0, 0], sizes = [1, 13, 8], strides = [1, 1, 1]} : vector<16x13x8xf32> to vector<1x13x8xf32>
    %323 = vector.shape_cast %322 : vector<1x13x8xf32> to vector<13x8xf32>
    %324 = arith.maximumf %321, %323 : vector<13x8xf32>
    %325 = arith.addf %313, %324 : vector<13x8xf32>
    %326 = tpu.iota {dimensions = array<i32: 0>} : vector<13x1xi32>
    %c2_i32 = arith.constant 2 : i32
    %c0_i32 = arith.constant 0 : i32
    %327 = arith.cmpi eq, %c2_i32, %c0_i32 : i32
    %c1_i32 = arith.constant 1 : i32
    %328 = arith.select %327, %c1_i32, %c2_i32 : i32
    %329 = vector.broadcast %328 : i32 to vector<13x1xi32>
    %330 = arith.remsi %326, %329 : vector<13x1xi32>
    %c0_i32_15 = arith.constant 0 : i32
    %331 = vector.broadcast %c0_i32_15 : i32 to vector<13x1xi32>
    %332 = arith.cmpi ne, %330, %331 : vector<13x1xi32>
    %c0_i32_16 = arith.constant 0 : i32
    %333 = vector.broadcast %c0_i32_16 : i32 to vector<13x1xi32>
    %334 = arith.cmpi slt, %330, %333 : vector<13x1xi32>
    %c0_i32_17 = arith.constant 0 : i32
    %335 = arith.cmpi slt, %328, %c0_i32_17 : i32
    %336 = vector.broadcast %335 : i1 to vector<13x1xi1>
    %337 = vector.broadcast %336 : vector<13x1xi1> to vector<13x1xi1>
    %338 = arith.xori %334, %337 : vector<13x1xi1>
    %339 = arith.andi %338, %332 : vector<13x1xi1>
    %340 = vector.broadcast %328 : i32 to vector<13x1xi32>
    %341 = arith.addi %330, %340 : vector<13x1xi32>
    %342 = arith.select %339, %341, %330 : vector<13x1xi1>, vector<13x1xi32>
    %c0_i32_18 = arith.constant 0 : i32
    %343 = vector.broadcast %c0_i32_18 : i32 to vector<13x1xi32>
    %344 = arith.cmpi eq, %342, %343 : vector<13x1xi32>
    %cst_19 = arith.constant 0.000000e+00 : f32
    %345 = vector.shape_cast %344 : vector<13x1xi1> to vector<13x1xi1>
    %346 = vector.broadcast %345 : vector<13x1xi1> to vector<13x8xi1>
    %347 = vector.broadcast %cst_19 : f32 to vector<13x8xf32>
    %348 = arith.select %346, %325, %347 : vector<13x8xi1>, vector<13x8xf32>
    %cst_20 = arith.constant dense<0.000000e+00> : vector<8xf32>
    %349 = vector.multi_reduction <add>, %348, %cst_20 [0] : vector<13x8xf32> to vector<8xf32>
    %350 = vector.shape_cast %349 : vector<8xf32> to vector<1x8xf32>
    %cst_21 = arith.constant 0.000000e+00 : f32
    %351 = vector.broadcast %cst_21 : f32 to vector<1x8xf32>
    %352 = arith.maximumf %350, %351 : vector<1x8xf32>
    %cst_22 = arith.constant 1.000000e+00 : f32
    %353 = vector.broadcast %cst_22 : f32 to vector<1x8xf32>
    %354 = arith.addf %352, %353 : vector<1x8xf32>
    %355 = math.log %354 : vector<1x8xf32>
    %cst_23 = arith.constant 2.000000e+00 : f32
    %356 = math.log %cst_23 : f32
    %357 = vector.broadcast %356 : f32 to vector<1x8xf32>
    %358 = arith.divf %355, %357 : vector<1x8xf32>
    %c0_24 = arith.constant 0 : index
    %c4 = arith.constant 4 : index
    %c0_25 = arith.constant 0 : index
    %359 = vector.load %arg1[%c0_24, %c4, %c0_25] : memref<16x16x8xf32, #tpu.memory_space<vmem>>, vector<16x12x8xf32>
    %360 = vector.extract_strided_slice %242 {offsets = [0, 0, 0], sizes = [16, 12, 8], strides = [1, 1, 1]} : vector<16x13x8xf32> to vector<16x12x8xf32>
    %361 = arith.maximumf %360, %359 : vector<16x12x8xf32>
    %362 = vector.extract_strided_slice %361 {offsets = [0, 0, 0], sizes = [1, 12, 8], strides = [1, 1, 1]} : vector<16x12x8xf32> to vector<1x12x8xf32>
    %363 = vector.shape_cast %362 : vector<1x12x8xf32> to vector<12x8xf32>
    %364 = vector.extract_strided_slice %361 {offsets = [1, 0, 0], sizes = [1, 12, 8], strides = [1, 1, 1]} : vector<16x12x8xf32> to vector<1x12x8xf32>
    %365 = vector.shape_cast %364 : vector<1x12x8xf32> to vector<12x8xf32>
    %366 = arith.maximumf %363, %365 : vector<12x8xf32>
    %367 = vector.extract_strided_slice %361 {offsets = [2, 0, 0], sizes = [1, 12, 8], strides = [1, 1, 1]} : vector<16x12x8xf32> to vector<1x12x8xf32>
    %368 = vector.shape_cast %367 : vector<1x12x8xf32> to vector<12x8xf32>
    %369 = arith.maximumf %366, %368 : vector<12x8xf32>
    %370 = vector.extract_strided_slice %361 {offsets = [3, 0, 0], sizes = [1, 12, 8], strides = [1, 1, 1]} : vector<16x12x8xf32> to vector<1x12x8xf32>
    %371 = vector.shape_cast %370 : vector<1x12x8xf32> to vector<12x8xf32>
    %372 = arith.maximumf %369, %371 : vector<12x8xf32>
    %373 = vector.extract_strided_slice %361 {offsets = [4, 0, 0], sizes = [1, 12, 8], strides = [1, 1, 1]} : vector<16x12x8xf32> to vector<1x12x8xf32>
    %374 = vector.shape_cast %373 : vector<1x12x8xf32> to vector<12x8xf32>
    %375 = arith.maximumf %372, %374 : vector<12x8xf32>
    %376 = vector.extract_strided_slice %361 {offsets = [2, 0, 0], sizes = [1, 12, 8], strides = [1, 1, 1]} : vector<16x12x8xf32> to vector<1x12x8xf32>
    %377 = vector.shape_cast %376 : vector<1x12x8xf32> to vector<12x8xf32>
    %378 = vector.extract_strided_slice %361 {offsets = [3, 0, 0], sizes = [1, 12, 8], strides = [1, 1, 1]} : vector<16x12x8xf32> to vector<1x12x8xf32>
    %379 = vector.shape_cast %378 : vector<1x12x8xf32> to vector<12x8xf32>
    %380 = arith.maximumf %377, %379 : vector<12x8xf32>
    %381 = vector.extract_strided_slice %361 {offsets = [4, 0, 0], sizes = [1, 12, 8], strides = [1, 1, 1]} : vector<16x12x8xf32> to vector<1x12x8xf32>
    %382 = vector.shape_cast %381 : vector<1x12x8xf32> to vector<12x8xf32>
    %383 = arith.maximumf %380, %382 : vector<12x8xf32>
    %384 = vector.extract_strided_slice %361 {offsets = [5, 0, 0], sizes = [1, 12, 8], strides = [1, 1, 1]} : vector<16x12x8xf32> to vector<1x12x8xf32>
    %385 = vector.shape_cast %384 : vector<1x12x8xf32> to vector<12x8xf32>
    %386 = arith.maximumf %383, %385 : vector<12x8xf32>
    %387 = vector.extract_strided_slice %361 {offsets = [6, 0, 0], sizes = [1, 12, 8], strides = [1, 1, 1]} : vector<16x12x8xf32> to vector<1x12x8xf32>
    %388 = vector.shape_cast %387 : vector<1x12x8xf32> to vector<12x8xf32>
    %389 = arith.maximumf %386, %388 : vector<12x8xf32>
    %390 = arith.addf %375, %389 : vector<12x8xf32>
    %391 = vector.extract_strided_slice %361 {offsets = [4, 0, 0], sizes = [1, 12, 8], strides = [1, 1, 1]} : vector<16x12x8xf32> to vector<1x12x8xf32>
    %392 = vector.shape_cast %391 : vector<1x12x8xf32> to vector<12x8xf32>
    %393 = vector.extract_strided_slice %361 {offsets = [5, 0, 0], sizes = [1, 12, 8], strides = [1, 1, 1]} : vector<16x12x8xf32> to vector<1x12x8xf32>
    %394 = vector.shape_cast %393 : vector<1x12x8xf32> to vector<12x8xf32>
    %395 = arith.maximumf %392, %394 : vector<12x8xf32>
    %396 = vector.extract_strided_slice %361 {offsets = [6, 0, 0], sizes = [1, 12, 8], strides = [1, 1, 1]} : vector<16x12x8xf32> to vector<1x12x8xf32>
    %397 = vector.shape_cast %396 : vector<1x12x8xf32> to vector<12x8xf32>
    %398 = arith.maximumf %395, %397 : vector<12x8xf32>
    %399 = vector.extract_strided_slice %361 {offsets = [7, 0, 0], sizes = [1, 12, 8], strides = [1, 1, 1]} : vector<16x12x8xf32> to vector<1x12x8xf32>
    %400 = vector.shape_cast %399 : vector<1x12x8xf32> to vector<12x8xf32>
    %401 = arith.maximumf %398, %400 : vector<12x8xf32>
    %402 = vector.extract_strided_slice %361 {offsets = [8, 0, 0], sizes = [1, 12, 8], strides = [1, 1, 1]} : vector<16x12x8xf32> to vector<1x12x8xf32>
    %403 = vector.shape_cast %402 : vector<1x12x8xf32> to vector<12x8xf32>
    %404 = arith.maximumf %401, %403 : vector<12x8xf32>
    %405 = arith.addf %390, %404 : vector<12x8xf32>
    %406 = vector.extract_strided_slice %361 {offsets = [6, 0, 0], sizes = [1, 12, 8], strides = [1, 1, 1]} : vector<16x12x8xf32> to vector<1x12x8xf32>
    %407 = vector.shape_cast %406 : vector<1x12x8xf32> to vector<12x8xf32>
    %408 = vector.extract_strided_slice %361 {offsets = [7, 0, 0], sizes = [1, 12, 8], strides = [1, 1, 1]} : vector<16x12x8xf32> to vector<1x12x8xf32>
    %409 = vector.shape_cast %408 : vector<1x12x8xf32> to vector<12x8xf32>
    %410 = arith.maximumf %407, %409 : vector<12x8xf32>
    %411 = vector.extract_strided_slice %361 {offsets = [8, 0, 0], sizes = [1, 12, 8], strides = [1, 1, 1]} : vector<16x12x8xf32> to vector<1x12x8xf32>
    %412 = vector.shape_cast %411 : vector<1x12x8xf32> to vector<12x8xf32>
    %413 = arith.maximumf %410, %412 : vector<12x8xf32>
    %414 = vector.extract_strided_slice %361 {offsets = [9, 0, 0], sizes = [1, 12, 8], strides = [1, 1, 1]} : vector<16x12x8xf32> to vector<1x12x8xf32>
    %415 = vector.shape_cast %414 : vector<1x12x8xf32> to vector<12x8xf32>
    %416 = arith.maximumf %413, %415 : vector<12x8xf32>
    %417 = vector.extract_strided_slice %361 {offsets = [10, 0, 0], sizes = [1, 12, 8], strides = [1, 1, 1]} : vector<16x12x8xf32> to vector<1x12x8xf32>
    %418 = vector.shape_cast %417 : vector<1x12x8xf32> to vector<12x8xf32>
    %419 = arith.maximumf %416, %418 : vector<12x8xf32>
    %420 = arith.addf %405, %419 : vector<12x8xf32>
    %421 = vector.extract_strided_slice %361 {offsets = [8, 0, 0], sizes = [1, 12, 8], strides = [1, 1, 1]} : vector<16x12x8xf32> to vector<1x12x8xf32>
    %422 = vector.shape_cast %421 : vector<1x12x8xf32> to vector<12x8xf32>
    %423 = vector.extract_strided_slice %361 {offsets = [9, 0, 0], sizes = [1, 12, 8], strides = [1, 1, 1]} : vector<16x12x8xf32> to vector<1x12x8xf32>
    %424 = vector.shape_cast %423 : vector<1x12x8xf32> to vector<12x8xf32>
    %425 = arith.maximumf %422, %424 : vector<12x8xf32>
    %426 = vector.extract_strided_slice %361 {offsets = [10, 0, 0], sizes = [1, 12, 8], strides = [1, 1, 1]} : vector<16x12x8xf32> to vector<1x12x8xf32>
    %427 = vector.shape_cast %426 : vector<1x12x8xf32> to vector<12x8xf32>
    %428 = arith.maximumf %425, %427 : vector<12x8xf32>
    %429 = vector.extract_strided_slice %361 {offsets = [11, 0, 0], sizes = [1, 12, 8], strides = [1, 1, 1]} : vector<16x12x8xf32> to vector<1x12x8xf32>
    %430 = vector.shape_cast %429 : vector<1x12x8xf32> to vector<12x8xf32>
    %431 = arith.maximumf %428, %430 : vector<12x8xf32>
    %432 = vector.extract_strided_slice %361 {offsets = [12, 0, 0], sizes = [1, 12, 8], strides = [1, 1, 1]} : vector<16x12x8xf32> to vector<1x12x8xf32>
    %433 = vector.shape_cast %432 : vector<1x12x8xf32> to vector<12x8xf32>
    %434 = arith.maximumf %431, %433 : vector<12x8xf32>
    %435 = arith.addf %420, %434 : vector<12x8xf32>
    %436 = vector.extract_strided_slice %361 {offsets = [10, 0, 0], sizes = [1, 12, 8], strides = [1, 1, 1]} : vector<16x12x8xf32> to vector<1x12x8xf32>
    %437 = vector.shape_cast %436 : vector<1x12x8xf32> to vector<12x8xf32>
    %438 = vector.extract_strided_slice %361 {offsets = [11, 0, 0], sizes = [1, 12, 8], strides = [1, 1, 1]} : vector<16x12x8xf32> to vector<1x12x8xf32>
    %439 = vector.shape_cast %438 : vector<1x12x8xf32> to vector<12x8xf32>
    %440 = arith.maximumf %437, %439 : vector<12x8xf32>
    %441 = vector.extract_strided_slice %361 {offsets = [12, 0, 0], sizes = [1, 12, 8], strides = [1, 1, 1]} : vector<16x12x8xf32> to vector<1x12x8xf32>
    %442 = vector.shape_cast %441 : vector<1x12x8xf32> to vector<12x8xf32>
    %443 = arith.maximumf %440, %442 : vector<12x8xf32>
    %444 = vector.extract_strided_slice %361 {offsets = [13, 0, 0], sizes = [1, 12, 8], strides = [1, 1, 1]} : vector<16x12x8xf32> to vector<1x12x8xf32>
    %445 = vector.shape_cast %444 : vector<1x12x8xf32> to vector<12x8xf32>
    %446 = arith.maximumf %443, %445 : vector<12x8xf32>
    %447 = vector.extract_strided_slice %361 {offsets = [14, 0, 0], sizes = [1, 12, 8], strides = [1, 1, 1]} : vector<16x12x8xf32> to vector<1x12x8xf32>
    %448 = vector.shape_cast %447 : vector<1x12x8xf32> to vector<12x8xf32>
    %449 = arith.maximumf %446, %448 : vector<12x8xf32>
    %450 = arith.addf %435, %449 : vector<12x8xf32>
    %451 = tpu.iota {dimensions = array<i32: 0>} : vector<12x1xi32>
    %c2_i32_26 = arith.constant 2 : i32
    %c0_i32_27 = arith.constant 0 : i32
    %452 = arith.cmpi eq, %c2_i32_26, %c0_i32_27 : i32
    %c1_i32_28 = arith.constant 1 : i32
    %453 = arith.select %452, %c1_i32_28, %c2_i32_26 : i32
    %454 = vector.broadcast %453 : i32 to vector<12x1xi32>
    %455 = arith.remsi %451, %454 : vector<12x1xi32>
    %c0_i32_29 = arith.constant 0 : i32
    %456 = vector.broadcast %c0_i32_29 : i32 to vector<12x1xi32>
    %457 = arith.cmpi ne, %455, %456 : vector<12x1xi32>
    %c0_i32_30 = arith.constant 0 : i32
    %458 = vector.broadcast %c0_i32_30 : i32 to vector<12x1xi32>
    %459 = arith.cmpi slt, %455, %458 : vector<12x1xi32>
    %c0_i32_31 = arith.constant 0 : i32
    %460 = arith.cmpi slt, %453, %c0_i32_31 : i32
    %461 = vector.broadcast %460 : i1 to vector<12x1xi1>
    %462 = vector.broadcast %461 : vector<12x1xi1> to vector<12x1xi1>
    %463 = arith.xori %459, %462 : vector<12x1xi1>
    %464 = arith.andi %463, %457 : vector<12x1xi1>
    %465 = vector.broadcast %453 : i32 to vector<12x1xi32>
    %466 = arith.addi %455, %465 : vector<12x1xi32>
    %467 = arith.select %464, %466, %455 : vector<12x1xi1>, vector<12x1xi32>
    %c0_i32_32 = arith.constant 0 : i32
    %468 = vector.broadcast %c0_i32_32 : i32 to vector<12x1xi32>
    %469 = arith.cmpi eq, %467, %468 : vector<12x1xi32>
    %cst_33 = arith.constant 0.000000e+00 : f32
    %470 = vector.shape_cast %469 : vector<12x1xi1> to vector<12x1xi1>
    %471 = vector.broadcast %470 : vector<12x1xi1> to vector<12x8xi1>
    %472 = vector.broadcast %cst_33 : f32 to vector<12x8xf32>
    %473 = arith.select %471, %450, %472 : vector<12x8xi1>, vector<12x8xf32>
    %cst_34 = arith.constant dense<0.000000e+00> : vector<8xf32>
    %474 = vector.multi_reduction <add>, %473, %cst_34 [0] : vector<12x8xf32> to vector<8xf32>
    %475 = vector.shape_cast %474 : vector<8xf32> to vector<1x8xf32>
    %cst_35 = arith.constant 0.000000e+00 : f32
    %476 = vector.broadcast %cst_35 : f32 to vector<1x8xf32>
    %477 = arith.maximumf %475, %476 : vector<1x8xf32>
    %cst_36 = arith.constant 1.000000e+00 : f32
    %478 = vector.broadcast %cst_36 : f32 to vector<1x8xf32>
    %479 = arith.addf %477, %478 : vector<1x8xf32>
    %480 = math.log %479 : vector<1x8xf32>
    %cst_37 = arith.constant 2.000000e+00 : f32
    %481 = math.log %cst_37 : f32
    %482 = vector.broadcast %481 : f32 to vector<1x8xf32>
    %483 = arith.divf %480, %482 : vector<1x8xf32>
    %c0_38 = arith.constant 0 : index
    %c5 = arith.constant 5 : index
    %c0_39 = arith.constant 0 : index
    %484 = vector.load %arg1[%c0_38, %c5, %c0_39] : memref<16x16x8xf32, #tpu.memory_space<vmem>>, vector<16x11x8xf32>
    %485 = vector.extract_strided_slice %361 {offsets = [0, 0, 0], sizes = [16, 11, 8], strides = [1, 1, 1]} : vector<16x12x8xf32> to vector<16x11x8xf32>
    %486 = arith.maximumf %485, %484 : vector<16x11x8xf32>
    %487 = vector.extract_strided_slice %486 {offsets = [0, 0, 0], sizes = [1, 11, 8], strides = [1, 1, 1]} : vector<16x11x8xf32> to vector<1x11x8xf32>
    %488 = vector.shape_cast %487 : vector<1x11x8xf32> to vector<11x8xf32>
    %489 = vector.extract_strided_slice %486 {offsets = [1, 0, 0], sizes = [1, 11, 8], strides = [1, 1, 1]} : vector<16x11x8xf32> to vector<1x11x8xf32>
    %490 = vector.shape_cast %489 : vector<1x11x8xf32> to vector<11x8xf32>
    %491 = arith.maximumf %488, %490 : vector<11x8xf32>
    %492 = vector.extract_strided_slice %486 {offsets = [2, 0, 0], sizes = [1, 11, 8], strides = [1, 1, 1]} : vector<16x11x8xf32> to vector<1x11x8xf32>
    %493 = vector.shape_cast %492 : vector<1x11x8xf32> to vector<11x8xf32>
    %494 = arith.maximumf %491, %493 : vector<11x8xf32>
    %495 = vector.extract_strided_slice %486 {offsets = [3, 0, 0], sizes = [1, 11, 8], strides = [1, 1, 1]} : vector<16x11x8xf32> to vector<1x11x8xf32>
    %496 = vector.shape_cast %495 : vector<1x11x8xf32> to vector<11x8xf32>
    %497 = arith.maximumf %494, %496 : vector<11x8xf32>
    %498 = vector.extract_strided_slice %486 {offsets = [4, 0, 0], sizes = [1, 11, 8], strides = [1, 1, 1]} : vector<16x11x8xf32> to vector<1x11x8xf32>
    %499 = vector.shape_cast %498 : vector<1x11x8xf32> to vector<11x8xf32>
    %500 = arith.maximumf %497, %499 : vector<11x8xf32>
    %501 = vector.extract_strided_slice %486 {offsets = [5, 0, 0], sizes = [1, 11, 8], strides = [1, 1, 1]} : vector<16x11x8xf32> to vector<1x11x8xf32>
    %502 = vector.shape_cast %501 : vector<1x11x8xf32> to vector<11x8xf32>
    %503 = arith.maximumf %500, %502 : vector<11x8xf32>
    %504 = vector.extract_strided_slice %486 {offsets = [3, 0, 0], sizes = [1, 11, 8], strides = [1, 1, 1]} : vector<16x11x8xf32> to vector<1x11x8xf32>
    %505 = vector.shape_cast %504 : vector<1x11x8xf32> to vector<11x8xf32>
    %506 = vector.extract_strided_slice %486 {offsets = [4, 0, 0], sizes = [1, 11, 8], strides = [1, 1, 1]} : vector<16x11x8xf32> to vector<1x11x8xf32>
    %507 = vector.shape_cast %506 : vector<1x11x8xf32> to vector<11x8xf32>
    %508 = arith.maximumf %505, %507 : vector<11x8xf32>
    %509 = vector.extract_strided_slice %486 {offsets = [5, 0, 0], sizes = [1, 11, 8], strides = [1, 1, 1]} : vector<16x11x8xf32> to vector<1x11x8xf32>
    %510 = vector.shape_cast %509 : vector<1x11x8xf32> to vector<11x8xf32>
    %511 = arith.maximumf %508, %510 : vector<11x8xf32>
    %512 = vector.extract_strided_slice %486 {offsets = [6, 0, 0], sizes = [1, 11, 8], strides = [1, 1, 1]} : vector<16x11x8xf32> to vector<1x11x8xf32>
    %513 = vector.shape_cast %512 : vector<1x11x8xf32> to vector<11x8xf32>
    %514 = arith.maximumf %511, %513 : vector<11x8xf32>
    %515 = vector.extract_strided_slice %486 {offsets = [7, 0, 0], sizes = [1, 11, 8], strides = [1, 1, 1]} : vector<16x11x8xf32> to vector<1x11x8xf32>
    %516 = vector.shape_cast %515 : vector<1x11x8xf32> to vector<11x8xf32>
    %517 = arith.maximumf %514, %516 : vector<11x8xf32>
    %518 = vector.extract_strided_slice %486 {offsets = [8, 0, 0], sizes = [1, 11, 8], strides = [1, 1, 1]} : vector<16x11x8xf32> to vector<1x11x8xf32>
    %519 = vector.shape_cast %518 : vector<1x11x8xf32> to vector<11x8xf32>
    %520 = arith.maximumf %517, %519 : vector<11x8xf32>
    %521 = arith.addf %503, %520 : vector<11x8xf32>
    %522 = vector.extract_strided_slice %486 {offsets = [6, 0, 0], sizes = [1, 11, 8], strides = [1, 1, 1]} : vector<16x11x8xf32> to vector<1x11x8xf32>
    %523 = vector.shape_cast %522 : vector<1x11x8xf32> to vector<11x8xf32>
    %524 = vector.extract_strided_slice %486 {offsets = [7, 0, 0], sizes = [1, 11, 8], strides = [1, 1, 1]} : vector<16x11x8xf32> to vector<1x11x8xf32>
    %525 = vector.shape_cast %524 : vector<1x11x8xf32> to vector<11x8xf32>
    %526 = arith.maximumf %523, %525 : vector<11x8xf32>
    %527 = vector.extract_strided_slice %486 {offsets = [8, 0, 0], sizes = [1, 11, 8], strides = [1, 1, 1]} : vector<16x11x8xf32> to vector<1x11x8xf32>
    %528 = vector.shape_cast %527 : vector<1x11x8xf32> to vector<11x8xf32>
    %529 = arith.maximumf %526, %528 : vector<11x8xf32>
    %530 = vector.extract_strided_slice %486 {offsets = [9, 0, 0], sizes = [1, 11, 8], strides = [1, 1, 1]} : vector<16x11x8xf32> to vector<1x11x8xf32>
    %531 = vector.shape_cast %530 : vector<1x11x8xf32> to vector<11x8xf32>
    %532 = arith.maximumf %529, %531 : vector<11x8xf32>
    %533 = vector.extract_strided_slice %486 {offsets = [10, 0, 0], sizes = [1, 11, 8], strides = [1, 1, 1]} : vector<16x11x8xf32> to vector<1x11x8xf32>
    %534 = vector.shape_cast %533 : vector<1x11x8xf32> to vector<11x8xf32>
    %535 = arith.maximumf %532, %534 : vector<11x8xf32>
    %536 = vector.extract_strided_slice %486 {offsets = [11, 0, 0], sizes = [1, 11, 8], strides = [1, 1, 1]} : vector<16x11x8xf32> to vector<1x11x8xf32>
    %537 = vector.shape_cast %536 : vector<1x11x8xf32> to vector<11x8xf32>
    %538 = arith.maximumf %535, %537 : vector<11x8xf32>
    %539 = arith.addf %521, %538 : vector<11x8xf32>
    %540 = vector.extract_strided_slice %486 {offsets = [9, 0, 0], sizes = [1, 11, 8], strides = [1, 1, 1]} : vector<16x11x8xf32> to vector<1x11x8xf32>
    %541 = vector.shape_cast %540 : vector<1x11x8xf32> to vector<11x8xf32>
    %542 = vector.extract_strided_slice %486 {offsets = [10, 0, 0], sizes = [1, 11, 8], strides = [1, 1, 1]} : vector<16x11x8xf32> to vector<1x11x8xf32>
    %543 = vector.shape_cast %542 : vector<1x11x8xf32> to vector<11x8xf32>
    %544 = arith.maximumf %541, %543 : vector<11x8xf32>
    %545 = vector.extract_strided_slice %486 {offsets = [11, 0, 0], sizes = [1, 11, 8], strides = [1, 1, 1]} : vector<16x11x8xf32> to vector<1x11x8xf32>
    %546 = vector.shape_cast %545 : vector<1x11x8xf32> to vector<11x8xf32>
    %547 = arith.maximumf %544, %546 : vector<11x8xf32>
    %548 = vector.extract_strided_slice %486 {offsets = [12, 0, 0], sizes = [1, 11, 8], strides = [1, 1, 1]} : vector<16x11x8xf32> to vector<1x11x8xf32>
    %549 = vector.shape_cast %548 : vector<1x11x8xf32> to vector<11x8xf32>
    %550 = arith.maximumf %547, %549 : vector<11x8xf32>
    %551 = vector.extract_strided_slice %486 {offsets = [13, 0, 0], sizes = [1, 11, 8], strides = [1, 1, 1]} : vector<16x11x8xf32> to vector<1x11x8xf32>
    %552 = vector.shape_cast %551 : vector<1x11x8xf32> to vector<11x8xf32>
    %553 = arith.maximumf %550, %552 : vector<11x8xf32>
    %554 = vector.extract_strided_slice %486 {offsets = [14, 0, 0], sizes = [1, 11, 8], strides = [1, 1, 1]} : vector<16x11x8xf32> to vector<1x11x8xf32>
    %555 = vector.shape_cast %554 : vector<1x11x8xf32> to vector<11x8xf32>
    %556 = arith.maximumf %553, %555 : vector<11x8xf32>
    %557 = arith.addf %539, %556 : vector<11x8xf32>
    %558 = tpu.iota {dimensions = array<i32: 0>} : vector<11x1xi32>
    %c3_i32 = arith.constant 3 : i32
    %c0_i32_40 = arith.constant 0 : i32
    %559 = arith.cmpi eq, %c3_i32, %c0_i32_40 : i32
    %c1_i32_41 = arith.constant 1 : i32
    %560 = arith.select %559, %c1_i32_41, %c3_i32 : i32
    %561 = vector.broadcast %560 : i32 to vector<11x1xi32>
    %562 = arith.remsi %558, %561 : vector<11x1xi32>
    %c0_i32_42 = arith.constant 0 : i32
    %563 = vector.broadcast %c0_i32_42 : i32 to vector<11x1xi32>
    %564 = arith.cmpi ne, %562, %563 : vector<11x1xi32>
    %c0_i32_43 = arith.constant 0 : i32
    %565 = vector.broadcast %c0_i32_43 : i32 to vector<11x1xi32>
    %566 = arith.cmpi slt, %562, %565 : vector<11x1xi32>
    %c0_i32_44 = arith.constant 0 : i32
    %567 = arith.cmpi slt, %560, %c0_i32_44 : i32
    %568 = vector.broadcast %567 : i1 to vector<11x1xi1>
    %569 = vector.broadcast %568 : vector<11x1xi1> to vector<11x1xi1>
    %570 = arith.xori %566, %569 : vector<11x1xi1>
    %571 = arith.andi %570, %564 : vector<11x1xi1>
    %572 = vector.broadcast %560 : i32 to vector<11x1xi32>
    %573 = arith.addi %562, %572 : vector<11x1xi32>
    %574 = arith.select %571, %573, %562 : vector<11x1xi1>, vector<11x1xi32>
    %c0_i32_45 = arith.constant 0 : i32
    %575 = vector.broadcast %c0_i32_45 : i32 to vector<11x1xi32>
    %576 = arith.cmpi eq, %574, %575 : vector<11x1xi32>
    %cst_46 = arith.constant 0.000000e+00 : f32
    %577 = vector.shape_cast %576 : vector<11x1xi1> to vector<11x1xi1>
    %578 = vector.broadcast %577 : vector<11x1xi1> to vector<11x8xi1>
    %579 = vector.broadcast %cst_46 : f32 to vector<11x8xf32>
    %580 = arith.select %578, %557, %579 : vector<11x8xi1>, vector<11x8xf32>
    %cst_47 = arith.constant dense<0.000000e+00> : vector<8xf32>
    %581 = vector.multi_reduction <add>, %580, %cst_47 [0] : vector<11x8xf32> to vector<8xf32>
    %582 = vector.shape_cast %581 : vector<8xf32> to vector<1x8xf32>
    %cst_48 = arith.constant 0.000000e+00 : f32
    %583 = vector.broadcast %cst_48 : f32 to vector<1x8xf32>
    %584 = arith.maximumf %582, %583 : vector<1x8xf32>
    %cst_49 = arith.constant 1.000000e+00 : f32
    %585 = vector.broadcast %cst_49 : f32 to vector<1x8xf32>
    %586 = arith.addf %584, %585 : vector<1x8xf32>
    %587 = math.log %586 : vector<1x8xf32>
    %cst_50 = arith.constant 2.000000e+00 : f32
    %588 = math.log %cst_50 : f32
    %589 = vector.broadcast %588 : f32 to vector<1x8xf32>
    %590 = arith.divf %587, %589 : vector<1x8xf32>
    %cst_51 = arith.constant 0.000000e+00 : f32
    %591 = vector.broadcast %cst_51 : f32 to vector<1x8xf32>
    %592 = arith.addf %591, %101 : vector<1x8xf32>
    %593 = arith.addf %592, %239 : vector<1x8xf32>
    %594 = arith.addf %593, %358 : vector<1x8xf32>
    %595 = arith.addf %594, %483 : vector<1x8xf32>
    %596 = arith.addf %595, %590 : vector<1x8xf32>
    %cst_52 = arith.constant 5.000000e+00 : f32
    %597 = vector.broadcast %cst_52 : f32 to vector<1x8xf32>
    %598 = arith.divf %596, %597 : vector<1x8xf32>
    %599 = arith.subf %101, %598 : vector<1x8xf32>
    %cst_53 = arith.constant 0.898370623 : f32
    %600 = vector.broadcast %cst_53 : f32 to vector<1x8xf32>
    %601 = arith.mulf %599, %600 : vector<1x8xf32>
    %cst_54 = arith.constant 0.000000e+00 : f32
    %602 = vector.broadcast %cst_54 : f32 to vector<1x8xf32>
    %603 = arith.addf %602, %601 : vector<1x8xf32>
    %604 = arith.subf %239, %598 : vector<1x8xf32>
    %cst_55 = arith.constant 0.313408107 : f32
    %605 = vector.broadcast %cst_55 : f32 to vector<1x8xf32>
    %606 = arith.mulf %604, %605 : vector<1x8xf32>
    %607 = arith.addf %603, %606 : vector<1x8xf32>
    %608 = arith.subf %358, %598 : vector<1x8xf32>
    %cst_56 = arith.constant -0.101629384 : f32
    %609 = vector.broadcast %cst_56 : f32 to vector<1x8xf32>
    %610 = arith.mulf %608, %609 : vector<1x8xf32>
    %611 = arith.addf %607, %610 : vector<1x8xf32>
    %612 = arith.subf %483, %598 : vector<1x8xf32>
    %cst_57 = arith.constant -0.42355749 : f32
    %613 = vector.broadcast %cst_57 : f32 to vector<1x8xf32>
    %614 = arith.mulf %612, %613 : vector<1x8xf32>
    %615 = arith.addf %611, %614 : vector<1x8xf32>
    %616 = arith.subf %590, %598 : vector<1x8xf32>
    %cst_58 = arith.constant -0.686591864 : f32
    %617 = vector.broadcast %cst_58 : f32 to vector<1x8xf32>
    %618 = arith.mulf %616, %617 : vector<1x8xf32>
    %619 = arith.addf %615, %618 : vector<1x8xf32>
    %cst_59 = arith.constant 0.638393402 : f32
    %620 = vector.broadcast %cst_59 : f32 to vector<1x8xf32>
    %621 = arith.mulf %619, %620 : vector<1x8xf32>
    %c0_60 = arith.constant 0 : index
    %c0_61 = arith.constant 0 : index
    %622 = vector.load %arg2[%c0_60, %c0_61] : memref<1x8xf32, #tpu.memory_space<vmem>>, vector<1x8xf32>
    tpu.vector_store %arg2[%c0_60, %c0_61], %621 {strides = array<i32>} : memref<1x8xf32, #tpu.memory_space<vmem>>, vector<1x8xf32>,
    return
  }
  func.func @transform_0(%arg0: i32) -> (i32, i32, i32) {
    %c0_i32 = arith.constant 0 : i32
    %c0_i32_0 = arith.constant 0 : i32
    %c0_i32_1 = arith.constant 0 : i32
    return %c0_i32, %c0_i32_0, %arg0 : i32, i32, i32
  }
  func.func @transform_1(%arg0: i32) -> (i32, i32) {
    %c0_i32 = arith.constant 0 : i32
    %c0_i32_0 = arith.constant 0 : i32
    return %c0_i32, %arg0 : i32, i32
  }
}

</mosaic_0001>

<bundles_post_ra>
// kernel: tpu_custom_call.1
= control target key start
LH: loop header
LB: loop body
LE: loop exit
PB: predicated region body
PF: predicated region fallthrough
CT: control target
= control target key end

     0   :  { %6 = vsyncpa [#allocation3], 0  ;;  %v459_v9 = vlaneseq  ;;  %vm163_vm0 = vcmask 64512   ;;  %vm165_vm1 = vcmask 63488   ;;  %vm327_vm2 = vcmask 62464   ;;  %s2244_s0 = inlined_call_operand.vmem [shape: f32[16,16,8], index: 0, kind: input, shape index: {}]   ;;  %s2245_s1 = inlined_call_operand.hbm [shape: f32[1,8], index: 1, kind: output, shape index: {}]  }
   0x1   :  { %v9_v0 = vld [vmem:[%s2244_s0 + $0x1] sm:$0xff]  ;;  %v10_v1 = vld [vmem:[%s2244_s0 + $0x9] sm:$0x7f]  ;;  %v11_v2 = vld [vmem:[%s2244_s0 + $0x11] sm:$0xff]  ;;  %vm495_vm3 = vcmask 61440   ;;  %vm630_vm6 = vcmask 60416  }
   0x2   :  { %v12_v3 = vld [vmem:[%s2244_s0 + $0x19] sm:$0x7f]  ;;  %v13_v4 = vld [vmem:[%s2244_s0 + $0x21] sm:$0xff]  ;;  %v14_v5 = vld [vmem:[%s2244_s0 + $0x29] sm:$0x7f]  ;;  %v1007_v41 = vshrl.u32 %v459_v9, 7 }
   0x3   :  { %v15_v6 = vld [vmem:[%s2244_s0 + $0x31] sm:$0xff]  ;;  %v16_v7 = vld [vmem:[%s2244_s0 + $0x39] sm:$0x7f]  ;;  %v17_v8 = vld [vmem:[%s2244_s0 + $0x41] sm:$0xff]  ;;  %vm791_vm14 = vcmask 59392  }
   0x4   :  { %v18_v10 = vld [vmem:[%s2244_s0 + $0x49] sm:$0x7f]  ;;  %v19_v11 = vld [vmem:[%s2244_s0 + $0x51] sm:$0xff]  ;;  %v20_v12 = vld [vmem:[%s2244_s0 + $0x59] sm:$0x7f] }
   0x5   :  { %v41_v13 = vld [vmem:[%s2244_s0] sm:$0xff]  ;;  %v42_v14 = vld [vmem:[%s2244_s0 + $0x8] sm:$0x7f]  ;;  %v43_v15 = vld [vmem:[%s2244_s0 + $0x10] sm:$0xff] }
   0x6   :  { %v21_v16 = vld [vmem:[%s2244_s0 + $0x61] sm:$0xff]  ;;  %v22_v17 = vld [vmem:[%s2244_s0 + $0x69] sm:$0x7f]  ;;  %v23_v18 = vld [vmem:[%s2244_s0 + $0x71] sm:$0xff]  ;;  %v957_v22 = vmax.f32 %v41_v13, %v9_v0  ;;  %v959_v23 = vmax.f32 %v43_v15, %v11_v2  ;;  %v979_v30 = vmax.f32 %v42_v14, %v10_v1 }
   0x7   :  { %v44_v19 = vld [vmem:[%s2244_s0 + $0x18] sm:$0x7f]  ;;  %v45_v20 = vld [vmem:[%s2244_s0 + $0x20] sm:$0xff]  ;;  %v46_v21 = vld [vmem:[%s2244_s0 + $0x28] sm:$0x7f] }
   0x8   :  { %v24_v24 = vld [vmem:[%s2244_s0 + $0x79] sm:$0x7f]  ;;  %v25_v25 = vld [vmem:[%s2244_s0 + $0x81] sm:$0xff]  ;;  %v26_v26 = vld [vmem:[%s2244_s0 + $0x89] sm:$0x7f]  ;;  %v981_v31 = vmax.f32 %v44_v19, %v12_v3  ;;  %v1001_v38 = vmax.f32 %v45_v20, %v13_v4  ;;  %v1003_v39 = vmax.f32 %v46_v21, %v14_v5  ;;  %v105_v40 = vmax.f32 %v957_v22, %v959_v23 }
   0x9   :  { %v47_v27 = vld [vmem:[%s2244_s0 + $0x30] sm:$0xff]  ;;  %v48_v28 = vld [vmem:[%s2244_s0 + $0x38] sm:$0x7f]  ;;  %v49_v29 = vld [vmem:[%s2244_s0 + $0x40] sm:$0xff] }
   0xa   :  { %v27_v32 = vld [vmem:[%s2244_s0 + $0x91] sm:$0xff]  ;;  %v28_v33 = vld [vmem:[%s2244_s0 + $0x99] sm:$0x7f]  ;;  %v29_v34 = vld [vmem:[%s2244_s0 + $0xa1] sm:$0xff]  ;;  %v1027_v48 = vmax.f32 %v47_v27, %v15_v6  ;;  %v1029_v49 = vmax.f32 %v48_v28, %v16_v7  ;;  %v1031_v50 = vmax.f32 %v49_v29, %v17_v8  ;;  %v106_v51 = vmax.f32 %v979_v30, %v981_v31 }
   0xb   :  { %v50_v35 = vld [vmem:[%s2244_s0 + $0x48] sm:$0x7f]  ;;  %v51_v36 = vld [vmem:[%s2244_s0 + $0x50] sm:$0xff]  ;;  %v52_v37 = vld [vmem:[%s2244_s0 + $0x58] sm:$0x7f]  ;;  %v107_v61 = vmax.f32 %v959_v23, %v1001_v38  ;;  %v108_v6 = vmax.f32 %v981_v31, %v1003_v39 }
   0xc   :  { %v30_v42 = vld [vmem:[%s2244_s0 + $0xa9] sm:$0x7f]  ;;  %v31_v43 = vld [vmem:[%s2244_s0 + $0xb1] sm:$0xff]  ;;  %v32_v44 = vld [vmem:[%s2244_s0 + $0xb9] sm:$0x7f]  ;;  %v1053_v58 = vmax.f32 %v50_v35, %v18_v10  ;;  %v1055_v59 = vmax.f32 %v51_v36, %v19_v11  ;;  %v1057_v60 = vmax.f32 %v52_v37, %v20_v12  ;;  %v111_v29 = vmax.f32 %v1001_v38, %v1027_v48 }
   0xd   :  { %v53_v45 = vld [vmem:[%s2244_s0 + $0x60] sm:$0xff]  ;;  %v54_v46 = vld [vmem:[%s2244_s0 + $0x68] sm:$0x7f]  ;;  %v55_v47 = vld [vmem:[%s2244_s0 + $0x70] sm:$0xff]  ;;  %v109_v13 = vadd.f32 %v107_v61, %v105_v40  ;;  %v110_v20 = vadd.f32 %v108_v6, %v106_v51  ;;  %v112_v40 = vmax.f32 %v1003_v39, %v1029_v49 }
   0xe   :  { %v33_v52 = vld [vmem:[%s2244_s0 + $0xc1] sm:$0xff]  ;;  %v34_v53 = vld [vmem:[%s2244_s0 + $0xc9] sm:$0x7f]  ;;  %v35_v54 = vld [vmem:[%s2244_s0 + $0xd1] sm:$0xff]  ;;  %v1076_v3 = vmax.f32 %v53_v45, %v21_v16  ;;  %v1078_v4 = vmax.f32 %v54_v46, %v22_v17  ;;  %v1080_v5 = vmax.f32 %v55_v47, %v23_v18  ;;  %v115_v47 = vmax.f32 %v1027_v48, %v1031_v50 }
   0xf   :  { %v56_v55 = vld [vmem:[%s2244_s0 + $0x78] sm:$0x7f]  ;;  %v57_v56 = vld [vmem:[%s2244_s0 + $0x80] sm:$0xff]  ;;  %v58_v57 = vld [vmem:[%s2244_s0 + $0x88] sm:$0x7f]  ;;  %v113_v46 = vadd.f32 %v111_v29, %v109_v13  ;;  %v114_v51 = vadd.f32 %v112_v40, %v110_v20 }
  0x10   :  { %v36_v62 = vld [vmem:[%s2244_s0 + $0xd9] sm:$0x7f]  ;;  %v37_v63 = vld [vmem:[%s2244_s0 + $0xe1] sm:$0xff]  ;;  %v59_v0 = vld [vmem:[%s2244_s0 + $0x90] sm:$0xff]  ;;  %v1093_v10 = vmax.f32 %v56_v55, %v24_v24  ;;  %v1095_v11 = vmax.f32 %v57_v56, %v25_v25  ;;  %v1097_v12 = vmax.f32 %v58_v57, %v26_v26  ;;  %v123_v61 = vmax.f32 %v1055_v59, %v1076_v3 }
  0x11   :  { %v60_v1 = vld [vmem:[%s2244_s0 + $0x98] sm:$0x7f]  ;;  %v61_v2 = vld [vmem:[%s2244_s0 + $0xa0] sm:$0xff]  ;;  %v62_v7 = vld [vmem:[%s2244_s0 + $0xa8] sm:$0x7f]  ;;  %v1108_v17 = vmax.f32 %v59_v0, %v27_v32  ;;  %v117_v57 = vadd.f32 %v115_v47, %v113_v46  ;;  %v124_v0 = vmax.f32 %v1057_v60, %v1078_v4 }
  0x12   :  { %v63_v8 = vld [vmem:[%s2244_s0 + $0xb0] sm:$0xff]  ;;  %v64_v9 = vld [vmem:[%s2244_s0 + $0xb8] sm:$0x7f]  ;;  %v65_v14 = vld [vmem:[%s2244_s0 + $0xc0] sm:$0xff]  ;;  %v1110_v18 = vmax.f32 %v60_v1, %v28_v33  ;;  %v1112_v19 = vmax.f32 %v61_v2, %v29_v34  ;;  %v1123_v26 = vmax.f32 %v62_v7, %v30_v42  ;;  %v127_v1 = vmax.f32 %v1076_v3, %v1080_v5 }
  0x13   :  { %v66_v15 = vld [vmem:[%s2244_s0 + $0xc8] sm:$0x7f]  ;;  %v67_v16 = vld [vmem:[%s2244_s0 + $0xd0] sm:$0xff]  ;;  %v68_v24 = vld [vmem:[%s2244_s0 + $0xd8] sm:$0x7f]  ;;  %v1125_v27 = vmax.f32 %v63_v8, %v31_v43  ;;  %v1127_v28 = vmax.f32 %v64_v9, %v32_v44  ;;  %v1140_v35 = vmax.f32 %v65_v14, %v33_v52  ;;  %v116_v52 = vmax.f32 %v1029_v49, %v1053_v58 }
  0x14   :  { %v38_v21 = vld [vmem:[%s2244_s0 + $0xe9] sm:$0x7f]  ;;  %v69_v25 = vld [vmem:[%s2244_s0 + $0xe0] sm:$0xff]  ;;  %v39_v32 = vld [vmem:[%s2244_s0 + $0xf1] sm:$0xff]  ;;  %v1142_v36 = vmax.f32 %v66_v15, %v34_v53  ;;  %v1144_v37 = vmax.f32 %v67_v16, %v35_v54  ;;  %v1154_v44 = vmax.f32 %v68_v24, %v36_v62  ;;  %v119_v53 = vmax.f32 %v1031_v50, %v1055_v59 }
  0x15   :  { %v70_v33 = vld [vmem:[%s2244_s0 + $0xe8] sm:$0x7f]  ;;  %v71_v34 = vld [vmem:[%s2244_s0 + $0xf0] sm:$0xff]  ;;  %v40_v42 = vld [vmem:[%s2244_s0 + $0xf9] sm:$0x7f]  ;;  %v1156_v45 = vmax.f32 %v69_v25, %v37_v63  ;;  %v120_v54 = vmax.f32 %v1053_v58, %v1057_v60  ;;  %v118_v63 = vadd.f32 %v116_v52, %v114_v51  ;;  %v128_v6 = vmax.f32 %v1078_v4, %v1093_v10 }
  0x16   :  { %v72_v43 = vld [vmem:[%s2244_s0 + $0xf8] sm:$0x7f]  ;;  %v1166_v55 = vmax.f32 %v70_v33, %v38_v21  ;;  %v1168_v56 = vmax.f32 %v71_v34, %v39_v32  ;;  %v121_v2 = vadd.f32 %v119_v53, %v117_v57  ;;  %v131_v7 = vmax.f32 %v1080_v5, %v1095_v11  ;;  %v180_v25 = vld [vmem:[%s2244_s0 + $0x2] sm:$0xff]  ;;  %v181_v40 = vld [vmem:[%s2244_s0 + $0xa] sm:$0x3f] }
  0x17   :  { %v1172_v62 = vmax.f32 %v72_v43, %v40_v42  ;;  %v132_v8 = vmax.f32 %v1093_v10, %v1097_v12  ;;  %v122_v9 = vadd.f32 %v120_v54, %v118_v63  ;;  %v135_v13 = vmax.f32 %v1095_v11, %v1108_v17  ;;  %v182_v42 = vld [vmem:[%s2244_s0 + $0x12] sm:$0xff]  ;;  %v183_v43 = vld [vmem:[%s2244_s0 + $0x1a] sm:$0x3f]  ;;  %v184_v53 = vld [vmem:[%s2244_s0 + $0x22] sm:$0xff] }
  0x18   :  { %v136_v14 = vmax.f32 %v1097_v12, %v1110_v18  ;;  %v139_v15 = vmax.f32 %v1108_v17, %v1112_v19  ;;  %v125_v16 = vadd.f32 %v123_v61, %v121_v2  ;;  %v140_v20 = vmax.f32 %v1110_v18, %v1123_v26  ;;  %v185_v54 = vld [vmem:[%s2244_s0 + $0x2a] sm:$0x3f]  ;;  %v186_v57 = vld [vmem:[%s2244_s0 + $0x32] sm:$0xff]  ;;  %v188_v2 = vld [vmem:[%s2244_s0 + $0x42] sm:$0xff] }
  0x19   :  { %v143_v21 = vmax.f32 %v1112_v19, %v1125_v27  ;;  %v144_v24 = vmax.f32 %v1123_v26, %v1127_v28  ;;  %v126_v29 = vadd.f32 %v124_v0, %v122_v9  ;;  %v147_v32 = vmax.f32 %v1125_v27, %v1140_v35  ;;  %v189_v9 = vld [vmem:[%s2244_s0 + $0x4a] sm:$0x3f]  ;;  %v191_v0 = vld [vmem:[%s2244_s0 + $0x5a] sm:$0x3f]  ;;  %v192_v63 = vld [vmem:[%s2244_s0 + $0x62] sm:$0xff] }
  0x1a   :  { %v148_v33 = vmax.f32 %v1127_v28, %v1142_v36  ;;  %v151_v34 = vmax.f32 %v1140_v35, %v1144_v37  ;;  %v129_v46 = vadd.f32 %v127_v1, %v125_v16  ;;  %v152_v47 = vmax.f32 %v1142_v36, %v1154_v44  ;;  %v187_v1 = vld [vmem:[%s2244_s0 + $0x3a] sm:$0x3f] }
  0x1b   :  { %v130_v61 = vadd.f32 %v128_v6, %v126_v29  ;;  %v1243_v6 = vmax.f32 %v957_v22, %v180_v25  ;;  %v190_v29 = vld [vmem:[%s2244_s0 + $0x52] sm:$0xff]  ;;  %v1255_v52 = vmax.f32 %v979_v30, %v181_v40  ;;  %v1258_v51 = vmax.f32 %v959_v23, %v182_v42  ;;  %v193_v25 = vld [vmem:[%s2244_s0 + $0x6a] sm:$0x3f]  ;;  %v195_v30 = vld [vmem:[%s2244_s0 + $0x7a] sm:$0x3f] }
  0x1c   :  { %v133_v16 = vadd.f32 %v131_v7, %v129_v46  ;;  %v1261_v22 = vmax.f32 %v981_v31, %v183_v43  ;;  %v194_v46 = vld [vmem:[%s2244_s0 + $0x72] sm:$0xff]  ;;  %v1273_v40 = vmax.f32 %v1001_v38, %v184_v53  ;;  %v1276_v23 = vmax.f32 %v1003_v39, %v185_v54  ;;  %v196_v42 = vld [vmem:[%s2244_s0 + $0x82] sm:$0xff]  ;;  %v197_v43 = vld [vmem:[%s2244_s0 + $0x8a] sm:$0x3f] }
  0x1d   :  { %v134_v7 = vadd.f32 %v132_v8, %v130_v61  ;;  %v1279_v31 = vmax.f32 %v1027_v48, %v186_v57  ;;  %v198_v38 = vld [vmem:[%s2244_s0 + $0x92] sm:$0xff]  ;;  %v1291_v53 = vmax.f32 %v1029_v49, %v187_v1  ;;  %v1294_v39 = vmax.f32 %v1031_v50, %v188_v2  ;;  %v199_v54 = vld [vmem:[%s2244_s0 + $0x9a] sm:$0x3f]  ;;  %v200_v57 = vld [vmem:[%s2244_s0 + $0xa2] sm:$0xff] }
  0x1e   :  { %v137_v8 = vadd.f32 %v135_v13, %v133_v16  ;;  %v1297_v48 = vmax.f32 %v1053_v58, %v189_v9  ;;  %v201_v49 = vld [vmem:[%s2244_s0 + $0xaa] sm:$0x3f]  ;;  %v1309_v61 = vmax.f32 %v1055_v59, %v190_v29  ;;  %v1312_v50 = vmax.f32 %v1057_v60, %v191_v0  ;;  %v202_v1 = vld [vmem:[%s2244_s0 + $0xb2] sm:$0xff]  ;;  %v203_v2 = vld [vmem:[%s2244_s0 + $0xba] sm:$0x3f] }
  0x1f   :  { %v138_v13 = vadd.f32 %v136_v14, %v134_v7  ;;  %v1315_v58 = vmax.f32 %v1076_v3, %v192_v63  ;;  %v204_v59 = vld [vmem:[%s2244_s0 + $0xc2] sm:$0xff]  ;;  %v1327_v9 = vmax.f32 %v1078_v4, %v193_v25  ;;  %v1330_v60 = vmax.f32 %v1080_v5, %v194_v46  ;;  %v205_v63 = vld [vmem:[%s2244_s0 + $0xca] sm:$0x3f]  ;;  %v206_v0 = vld [vmem:[%s2244_s0 + $0xd2] sm:$0xff] }
  0x20   :  { %v141_v14 = vadd.f32 %v139_v15, %v137_v8  ;;  %v1333_v3 = vmax.f32 %v1093_v10, %v195_v30  ;;  %v207_v4 = vld [vmem:[%s2244_s0 + $0xda] sm:$0x3f]  ;;  %v1345_v5 = vmax.f32 %v1095_v11, %v196_v42  ;;  %v1348_v10 = vmax.f32 %v1097_v12, %v197_v43  ;;  %v208_v29 = vld [vmem:[%s2244_s0 + $0xe2] sm:$0xff] }
  0x21   :  { %v142_v15 = vadd.f32 %v140_v20, %v138_v13  ;;  %v1351_v20 = vmax.f32 %v1108_v17, %v198_v38  ;;  %v1360_v7 = vmax.f32 %v1110_v18, %v199_v54  ;;  %v1363_v11 = vmax.f32 %v1112_v19, %v200_v57 }
  0x22   :  { %v145_v16 = vadd.f32 %v143_v21, %v141_v14  ;;  %v1366_v12 = vmax.f32 %v1123_v26, %v201_v49  ;;  %v1372_v21 = vmax.f32 %v1125_v27, %v202_v1  ;;  %v1375_v25 = vmax.f32 %v1127_v28, %v203_v2 }
  0x23   :  { %v146_v17 = vadd.f32 %v144_v24, %v142_v15  ;;  %v1378_v46 = vmax.f32 %v1140_v35, %v204_v59  ;;  %v1384_v19 = vmax.f32 %v1142_v36, %v205_v63  ;;  %v1387_v30 = vmax.f32 %v1144_v37, %v206_v0 }
  0x24   :  { %v149_v18 = vadd.f32 %v147_v32, %v145_v16  ;;  %v1390_v26 = vmax.f32 %v1154_v44, %v207_v4  ;;  %v1396_v8 = vmax.f32 %v1156_v45, %v208_v29  ;;  %v244_v27 = vmax.f32 %v1243_v6, %v1258_v51 }
  0x25   :  { %v150_v24 = vadd.f32 %v148_v33, %v146_v17  ;;  %v245_v32 = vmax.f32 %v1255_v52, %v1261_v22  ;;  %v248_v43 = vmax.f32 %v1258_v51, %v1273_v40  ;;  %v249_v28 = vmax.f32 %v1261_v22, %v1276_v23 }
  0x26   :  { %v153_v42 = vadd.f32 %v151_v34, %v149_v18  ;;  %v254_v33 = vmax.f32 %v1273_v40, %v1279_v31  ;;  %v246_v13 = vmax.f32 %v244_v27, %v1273_v40  ;;  %v255_v35 = vmax.f32 %v1276_v23, %v1291_v53 }
  0x27   :  { %v154_v38 = vadd.f32 %v152_v47, %v150_v24  ;;  %v247_v54 = vmax.f32 %v245_v32, %v1276_v23  ;;  %v2246_v34 = vmax.f32 %v1144_v37, %v1156_v45  ;;  %v250_v49 = vmax.f32 %v248_v43, %v1279_v31 }
  0x28   :  { %v251_v14 = vmax.f32 %v249_v28, %v1291_v53  ;;  %v256_v1 = vmax.f32 %v254_v33, %v1294_v39  ;;  %v2247_v36 = vmax.f32 %v1154_v44, %v1166_v55  ;;  %v257_v2 = vmax.f32 %v255_v35, %v1297_v48 }
  0x29   :  { %v157_v57 = vadd.f32 %v2246_v34, %v153_v42  ;;  %v260_v59 = vmax.f32 %v1279_v31, %v1294_v39  ;;  %v261_v15 = vmax.f32 %v1291_v53, %v1297_v48  ;;  %v2248_v37 = vmax.f32 %v1156_v45, %v1168_v56 }
  0x2a   :  { %v158_v47 = vadd.f32 %v2247_v36, %v154_v38  ;;  %v252_v0 = vadd.f32 %v250_v49, %v246_v13  ;;  %v253_v4 = vadd.f32 %v251_v14, %v247_v54  ;;  %v266_v16 = vmax.f32 %v1294_v39, %v1309_v61 }
  0x2b   :  { %v161_v63 = vadd.f32 %v2248_v37, %v157_v57  ;;  %v2249_v44 = vmax.f32 %v1166_v55, %v1172_v62  ;;  %v262_v17 = vmax.f32 %v260_v59, %v1309_v61  ;;  %v263_v18 = vmax.f32 %v261_v15, %v1312_v50 }
  0x2c   :  { %v267_v24 = vmax.f32 %v1297_v48, %v1312_v50  ;;  %v258_v45 = vadd.f32 %v256_v1, %v252_v0  ;;  %v259_v32 = vadd.f32 %v257_v2, %v253_v4  ;;  %v268_v42 = vmax.f32 %v266_v16, %v1315_v58 }
  0x2d   :  { %v162_v29 = vadd.f32 %v2249_v44, %v158_v47  ;;  %v164_v27 = vsel %vm163_vm0, %v161_v63, 0.0  ;;  %v272_v33 = vmax.f32 %v1309_v61, %v1315_v58  ;;  %v273_v38 = vmax.f32 %v1312_v50, %v1327_v9  ;;  %v209_v47 = vld [vmem:[%s2244_s0 + $0xea] sm:$0x3f] }
  0x2e   :  { %v269_v28 = vmax.f32 %v267_v24, %v1327_v9  ;;  %v264_v54 = vadd.f32 %v262_v17, %v258_v45  ;;  %v265_v35 = vadd.f32 %v263_v18, %v259_v32  ;;  %v278_v34 = vmax.f32 %v1315_v58, %v1330_v60  ;;  %v210_v32 = vld [vmem:[%s2244_s0 + $0xf2] sm:$0xff] }
  0x2f   :  { %v166_v43 = vsel %vm165_vm1, %v162_v29, 0.0  ;;  %v274_v57 = vmax.f32 %v272_v33, %v1330_v60  ;;  %v275_v49 = vmax.f32 %v273_v38, %v1333_v3  ;;  %v279_v14 = vmax.f32 %v1327_v9, %v1333_v3 }
  0x30   :  { %v167_v13 = vadd.f32 %v166_v43, %v164_v27  ;;  %v284_v1 = vmax.f32 %v1330_v60, %v1345_v5  ;;  %v270_v2 = vadd.f32 %v268_v42, %v264_v54  ;;  %v271_v59 = vadd.f32 %v269_v28, %v265_v35  ;;  %v211_v42 = vld [vmem:[%s2244_s0 + $0xfa] sm:$0x3f] }
  0x31   :  { %v280_v15 = vmax.f32 %v278_v34, %v1345_v5  ;;  %v281_v37 = vmax.f32 %v279_v14, %v1348_v10  ;;  %v285_v63 = vmax.f32 %v1333_v3, %v1348_v10  ;;  %v290_v4 = vmax.f32 %v1345_v5, %v1351_v20 }
  0x32   :  { %v168_v36 = vrot.slane %v167_v13, 4  ;;  %v286_v0 = vmax.f32 %v284_v1, %v1351_v20  ;;  %v276_v44 = vadd.f32 %v274_v57, %v270_v2  ;;  %v277_v29 = vadd.f32 %v275_v49, %v271_v59 }
  0x33   :  { %v291_v17 = vmax.f32 %v1348_v10, %v1360_v7  ;;  %v1473_v18 = vmax.f32 %v1166_v55, %v209_v47  ;;  %v287_v24 = vmax.f32 %v285_v63, %v1360_v7  ;;  %v296_v27 = vmax.f32 %v1351_v20, %v1363_v11 }
  0x34   :  { %v169_v16 = vadd.f32 %v168_v36, %v167_v13  ;;  %v297_v45 = vmax.f32 %v1360_v7, %v1366_v12  ;;  %v282_v43 = vadd.f32 %v280_v15, %v276_v44  ;;  %v283_v28 = vadd.f32 %v281_v37, %v277_v29 }
  0x35   :  { %v292_v55 = vmax.f32 %v290_v4, %v1363_v11  ;;  %v293_v33 = vmax.f32 %v291_v17, %v1366_v12  ;;  %v298_v13 = vmax.f32 %v296_v27, %v1372_v21  ;;  %v302_v54 = vmax.f32 %v1363_v11, %v1372_v21 }
  0x36   :  { %v170_v38 = vrot.slane %v169_v16, 2  ;;  %v303_v35 = vmax.f32 %v1366_v12, %v1375_v25  ;;  %v288_v34 = vadd.f32 %v286_v0, %v282_v43  ;;  %v289_v57 = vadd.f32 %v287_v24, %v283_v28 }
  0x37   :  { %v299_v49 = vmax.f32 %v297_v45, %v1375_v25  ;;  %v308_v14 = vmax.f32 %v1372_v21, %v1378_v46  ;;  %v1497_v1 = vmax.f32 %v1168_v56, %v210_v32  ;;  %v1500_v36 = vmax.f32 %v1172_v62, %v211_v42 }
  0x38   :  { %v304_v47 = vmax.f32 %v302_v54, %v1378_v46  ;;  %v309_v2 = vmax.f32 %v1375_v25, %v1384_v19  ;;  %v294_v59 = vadd.f32 %v292_v55, %v288_v34  ;;  %v295_v15 = vadd.f32 %v293_v33, %v289_v57  ;;  %v344_v54 = vld [vmem:[%s2244_s0 + $0x1b] sm:$0x1f]  ;;  %v345_v34 = vld [vmem:[%s2244_s0 + $0x23] sm:$0xff]  ;;  %v346_v57 = vld [vmem:[%s2244_s0 + $0x2b] sm:$0x1f] }
  0x39   :  { %v305_v37 = vmax.f32 %v303_v35, %v1384_v19  ;;  %v314_v63 = vmax.f32 %v1378_v46, %v1387_v30  ;;  %v1508_v0 = vadd.f32 %v170_v38, %v169_v16  ;;  %v310_v56 = vmax.f32 %v308_v14, %v1387_v30  ;;  %v341_v16 = vld [vmem:[%s2244_s0 + $0x3] sm:$0xff]  ;;  %v342_v38 = vld [vmem:[%s2244_s0 + $0xb] sm:$0x1f] }
  0x3a   :  { %v311_v4 = vmax.f32 %v309_v2, %v1390_v26  ;;  %v315_v62 = vmax.f32 %v1384_v19, %v1390_v26  ;;  %v300_v44 = vadd.f32 %v298_v13, %v294_v59  ;;  %v301_v29 = vadd.f32 %v299_v49, %v295_v15  ;;  %v343_v13 = vld [vmem:[%s2244_s0 + $0x13] sm:$0xff]  ;;  %v354_v14 = vld [vmem:[%s2244_s0 + $0x6b] sm:$0x1f] }
  0x3b   :  { %v320_v17 = vmax.f32 %v1387_v30, %v1396_v8  ;;  %v321_v24 = vmax.f32 %v1390_v26, %v1473_v18  ;;  %v1522_v27 = vadd.s32 8, %v1007_v41  ;;  %v466_v45 = vand.u32 1, %v1007_v41  ;;  %v347_v49 = vld [vmem:[%s2244_s0 + $0x33] sm:$0xff] }
  0x3c   :  { %v1526_v32 = vmul.u32.u64.low 2863311531, %v1007_v41  ;;  %v1527_v42 = vmul.u32.u64.high 2863311531, %v1007_v41, %v1526_v32  ;;  %v306_v43 = vadd.f32 %v304_v47, %v300_v44  ;;  %v307_v28 = vadd.f32 %v305_v37, %v301_v29  ;;  %v348_v37 = vld [vmem:[%s2244_s0 + $0x3b] sm:$0x1f]  ;;  %v353_v44 = vld [vmem:[%s2244_s0 + $0x63] sm:$0xff] }
  0x3d   :  { %v316_v55 = vmax.f32 %v314_v63, %v1396_v8  ;;  %v317_v33 = vmax.f32 %v315_v62, %v1473_v18  ;;  %v172_v35 = vrot.slane %v1508_v0, 1  ;;  %v322_v59 = vmax.f32 %v320_v17, %v1497_v1  ;;  %v349_v63 = vld [vmem:[%s2244_s0 + $0x43] sm:$0xff]  ;;  %v350_v62 = vld [vmem:[%s2244_s0 + $0x4b] sm:$0x1f] }
  0x3e   :  { %v312_v47 = vadd.f32 %v310_v56, %v306_v43  ;;  %v313_v2 = vadd.f32 %v311_v4, %v307_v28  ;;  %v323_v15 = vmax.f32 %v321_v24, %v1500_v36  ;;  %v351_v56 = vld [vmem:[%s2244_s0 + $0x53] sm:$0xff]  ;;  %v352_v4 = vld [vmem:[%s2244_s0 + $0x5b] sm:$0x1f]  ;;  %v1573_v29 = vmax.f32 %v1243_v6, %v341_v16  ;;  %v357_v16 = vld [vmem:[%s2244_s0 + $0x83] sm:$0xff] }
  0x3f   :  { %v1576_v17 = vmax.f32 %v1255_v52, %v342_v38  ;;  %v1579_v24 = vmax.f32 %v1258_v51, %v343_v13  ;;  %v1582_v32 = vmax.f32 %v1261_v22, %v344_v54  ;;  %v355_v6 = vld [vmem:[%s2244_s0 + $0x73] sm:$0xff]  ;;  %v356_v52 = vld [vmem:[%s2244_s0 + $0x7b] sm:$0x1f]  ;;  %v1594_v51 = vmax.f32 %v1273_v40, %v345_v34 }
  0x40   :  { %v318_v43 = vadd.f32 %v316_v55, %v312_v47  ;;  %v319_v28 = vadd.f32 %v317_v33, %v313_v2  ;;  %v1597_v22 = vmax.f32 %v1276_v23, %v346_v57  ;;  %v358_v55 = vld [vmem:[%s2244_s0 + $0x8b] sm:$0x1f]  ;;  %v359_v33 = vld [vmem:[%s2244_s0 + $0x93] sm:$0xff]  ;;  %v1609_v38 = vmax.f32 %v1279_v31, %v347_v49  ;;  %v360_v57 = vld [vmem:[%s2244_s0 + $0x9b] sm:$0x1f] }
  0x41   :  { %v1612_v40 = vmax.f32 %v1291_v53, %v348_v37  ;;  %v1615_v23 = vmax.f32 %v1294_v39, %v349_v63  ;;  %v1618_v13 = vmax.f32 %v1297_v48, %v350_v62  ;;  %v361_v31 = vld [vmem:[%s2244_s0 + $0xa3] sm:$0xff]  ;;  %v362_v53 = vld [vmem:[%s2244_s0 + $0xab] sm:$0x1f]  ;;  %v1630_v39 = vmax.f32 %v1309_v61, %v351_v56  ;;  %v363_v49 = vld [vmem:[%s2244_s0 + $0xb3] sm:$0xff] }
  0x42   :  { %v324_v54 = vadd.f32 %v322_v59, %v318_v43  ;;  %v325_v34 = vadd.f32 %v323_v15, %v319_v28  ;;  %v1633_v48 = vmax.f32 %v1312_v50, %v352_v4  ;;  %v364_v47 = vld [vmem:[%s2244_s0 + $0xbb] sm:$0x1f]  ;;  %v365_v2 = vld [vmem:[%s2244_s0 + $0xc3] sm:$0xff]  ;;  %v1645_v59 = vmax.f32 %v1315_v58, %v353_v44  ;;  %v366_v62 = vld [vmem:[%s2244_s0 + $0xcb] sm:$0x1f] }
  0x43   :  { %v1648_v61 = vmax.f32 %v1327_v9, %v354_v14  ;;  %v1651_v50 = vmax.f32 %v1330_v60, %v355_v6  ;;  %v1654_v15 = vmax.f32 %v1333_v3, %v356_v52  ;;  %v1662_v58 = vmax.f32 %v1345_v5, %v357_v16  ;;  %v367_v4 = vld [vmem:[%s2244_s0 + $0xd3] sm:$0xff] }
  0x44   :  { %v326_v37 = vsel %vm163_vm0, %v324_v54, 0.0  ;;  %v328_v63 = vsel %vm327_vm2, %v325_v34, 0.0  ;;  %v1665_v9 = vmax.f32 %v1348_v10, %v358_v55  ;;  %v1668_v60 = vmax.f32 %v1351_v20, %v359_v33  ;;  %v369_v33 = vld [vmem:[%s2244_s0 + $0xe3] sm:$0xff]  ;;  %v370_v54 = vld [vmem:[%s2244_s0 + $0xeb] sm:$0x1f] }
  0x45   :  { %v329_v14 = vadd.f32 %v328_v63, %v326_v37  ;;  %v1671_v3 = vmax.f32 %v1360_v7, %v360_v57  ;;  %v1674_v56 = vmax.f32 %v1363_v11, %v361_v31  ;;  %v1680_v5 = vmax.f32 %v1366_v12, %v362_v53 }
  0x46   :  { %v1683_v10 = vmax.f32 %v1372_v21, %v363_v49  ;;  %v1686_v44 = vmax.f32 %v1375_v25, %v364_v47  ;;  %v1689_v20 = vmax.f32 %v1378_v46, %v365_v2  ;;  %v1692_v11 = vmax.f32 %v1384_v19, %v366_v62  ;;  %v368_v21 = vld [vmem:[%s2244_s0 + $0xdb] sm:$0x1f] }
  0x47   :  { %v330_v7 = vrot.slane %v329_v14, 4  ;;  %v405_v43 = vmax.f32 %v1573_v29, %v1579_v24  ;;  %v406_v12 = vmax.f32 %v1576_v17, %v1582_v32  ;;  %v411_v25 = vmax.f32 %v1594_v51, %v1609_v38 }
  0x48   :  { %v412_v46 = vmax.f32 %v1597_v22, %v1612_v40  ;;  %v419_v19 = vmax.f32 %v1615_v23, %v1630_v39  ;;  %v420_v28 = vmax.f32 %v1618_v13, %v1633_v48  ;;  %v1710_v6 = vmax.f32 %v1387_v30, %v367_v4 }
  0x49   :  { %v407_v52 = vmax.f32 %v405_v43, %v1594_v51  ;;  %v408_v16 = vmax.f32 %v406_v12, %v1597_v22  ;;  %v427_v55 = vmax.f32 %v1645_v59, %v1651_v50  ;;  %v413_v34 = vmax.f32 %v411_v25, %v1615_v23  ;;  %v371_v12 = vld [vmem:[%s2244_s0 + $0xf3] sm:$0xff] }
  0x4a   :  { %v414_v30 = vmax.f32 %v412_v46, %v1618_v13  ;;  %v421_v57 = vmax.f32 %v419_v19, %v1645_v59  ;;  %v422_v31 = vmax.f32 %v420_v28, %v1648_v61  ;;  %v331_v53 = vadd.f32 %v330_v7, %v329_v14 }
  0x4b   :  { %v1727_v49 = vmax.f32 %v1390_v26, %v368_v21  ;;  %v409_v47 = vmax.f32 %v407_v52, %v1609_v38  ;;  %v410_v2 = vmax.f32 %v408_v16, %v1612_v40  ;;  %v415_v37 = vmax.f32 %v413_v34, %v1630_v39  ;;  %v372_v16 = vld [vmem:[%s2244_s0 + $0xfb] sm:$0x1f] }
  0x4c   :  { %v416_v63 = vmax.f32 %v414_v30, %v1633_v48  ;;  %v423_v62 = vmax.f32 %v421_v57, %v1651_v50  ;;  %v424_v4 = vmax.f32 %v422_v31, %v1654_v15  ;;  %v1736_v43 = vmax.f32 %v1396_v8, %v369_v33 }
  0x4d   :  { %v1739_v14 = vmax.f32 %v1473_v18, %v370_v54  ;;  %v428_v26 = vmax.f32 %v1648_v61, %v1654_v15  ;;  %v429_v7 = vmax.f32 %v427_v55, %v1662_v58  ;;  %v417_v21 = vadd.f32 %v415_v37, %v409_v47 }
  0x4e   :  { %v418_v25 = vadd.f32 %v416_v63, %v410_v2  ;;  %v435_v46 = vmax.f32 %v1662_v58, %v1668_v60  ;;  %v436_v8 = vmax.f32 %v1665_v9, %v1671_v3  ;;  %v332_v19 = vrot.slane %v331_v53, 2 }
  0x4f   :  { %v430_v18 = vmax.f32 %v428_v26, %v1665_v9  ;;  %v431_v28 = vmax.f32 %v429_v7, %v1668_v60  ;;  %v443_v52 = vmax.f32 %v1674_v56, %v1683_v10  ;;  %v425_v55 = vadd.f32 %v423_v62, %v417_v21 }
  0x50   :  { %v426_v33 = vadd.f32 %v424_v4, %v418_v25  ;;  %v437_v54 = vmax.f32 %v435_v46, %v1674_v56  ;;  %v438_v34 = vmax.f32 %v436_v8, %v1680_v5  ;;  %v403_v30 = vmax.f32 %v1497_v1, %v371_v12 }
  0x51   :  { %v432_v57 = vmax.f32 %v430_v18, %v1671_v3  ;;  %v444_v31 = vmax.f32 %v1680_v5, %v1686_v44  ;;  %v445_v47 = vmax.f32 %v443_v52, %v1689_v20  ;;  %v433_v2 = vadd.f32 %v431_v28, %v425_v55  ;;  %v510_v28 = vld [vmem:[%s2244_s0 + $0xc] sm:$0xf] }
  0x52   :  { %v439_v37 = vmax.f32 %v437_v54, %v1683_v10  ;;  %v440_v63 = vmax.f32 %v438_v34, %v1686_v44  ;;  %v451_v62 = vmax.f32 %v1689_v20, %v1710_v6  ;;  %v404_v4 = vmax.f32 %v1500_v36, %v372_v16  ;;  %v509_v36 = vld [vmem:[%s2244_s0 + $0x4] sm:$0xff]  ;;  %v511_v54 = vld [vmem:[%s2244_s0 + $0x14] sm:$0xff]  ;;  %v512_v34 = vld [vmem:[%s2244_s0 + $0x1c] sm:$0xf] }
  0x53   :  { %v434_v26 = vadd.f32 %v432_v57, %v426_v33  ;;  %v446_v1 = vmax.f32 %v444_v31, %v1692_v11  ;;  %v447_v7 = vmax.f32 %v445_v47, %v1710_v6  ;;  %v1772_v12 = vadd.f32 %v332_v19, %v331_v53  ;;  %v513_v57 = vld [vmem:[%s2244_s0 + $0x24] sm:$0xff] }
  0x54   :  { %v441_v21 = vadd.f32 %v439_v37, %v433_v2  ;;  %v452_v25 = vmax.f32 %v1692_v11, %v1727_v49  ;;  %v453_v46 = vmax.f32 %v451_v62, %v1736_v43  ;;  %vm1792_vm4 = vcmp.eq.s32.totalorder %v466_v45, 0  ;;  %v514_v2 = vld [vmem:[%s2244_s0 + $0x2c] sm:$0xf]  ;;  %v515_v37 = vld [vmem:[%s2244_s0 + $0x34] sm:$0xff] }
  0x55   :  { %v442_v8 = vadd.f32 %v440_v63, %v434_v26  ;;  %v448_v18 = vmax.f32 %v446_v1, %v1727_v49  ;;  %v1785_v53 = vmul.u32.u64.low 2863311531, %v1522_v27  ;;  %v1786_v19 = vmul.u32.u64.high 2863311531, %v1522_v27, %v1785_v53  ;;  %v517_v26 = vld [vmem:[%s2244_s0 + $0x44] sm:$0xff]  ;;  %v518_v1 = vld [vmem:[%s2244_s0 + $0x4c] sm:$0xf] }
  0x56   :  { %v449_v52 = vadd.f32 %v447_v7, %v441_v21  ;;  %v454_v16 = vmax.f32 %v452_v25, %v1739_v14  ;;  %v455_v55 = vmax.f32 %v453_v46, %v403_v30  ;;  %v1808_v30 = vadd.f32 %v172_v35, %v1508_v0  ;;  %v516_v0 = vld [vmem:[%s2244_s0 + $0x3c] sm:$0xf]  ;;  %v519_v7 = vld [vmem:[%s2244_s0 + $0x54] sm:$0xff]  ;;  %v521_v25 = vld [vmem:[%s2244_s0 + $0x64] sm:$0xff] }
  0x57   :  { %v450_v45 = vadd.f32 %v448_v18, %v442_v8  ;;  %v2252_v31 = vand.u32 1, %v1522_v27  ;;  %v334_v35 = vrot.slane %v1772_v12, 1  ;;  %v1836_v21 = vmax.f32 %v1573_v29, %v509_v36  ;;  %v522_v46 = vld [vmem:[%s2244_s0 + $0x6c] sm:$0xf] }
  0x58   :  { %v456_v63 = vmax.f32 %v454_v16, %v404_v4  ;;  %v457_v62 = vadd.f32 %v455_v55, %v449_v52  ;;  %v520_v4 = vld [vmem:[%s2244_s0 + $0x5c] sm:$0xf]  ;;  %v1848_v8 = vmax.f32 %v1576_v17, %v510_v28  ;;  %v1851_v18 = vmax.f32 %v1579_v24, %v511_v54  ;;  %v523_v16 = vld [vmem:[%s2244_s0 + $0x74] sm:$0xff]  ;;  %v525_v24 = vld [vmem:[%s2244_s0 + $0x84] sm:$0xff] }
  0x59   :  { %vm1812_vm5 = vcmp.eq.s32.totalorder %v2252_v31, 0  ;;  %v1854_v29 = vmax.f32 %v1582_v32, %v512_v34  ;;  %v1857_v36 = vmax.f32 %v1594_v51, %v513_v57  ;;  %v524_v17 = vld [vmem:[%s2244_s0 + $0x7c] sm:$0xf]  ;;  %v1871_v32 = vmax.f32 %v1597_v22, %v514_v2  ;;  %v526_v55 = vld [vmem:[%s2244_s0 + $0x8c] sm:$0xf]  ;;  %v527_v54 = vld [vmem:[%s2244_s0 + $0x94] sm:$0xff] }
  0x5a   :  { %v458_v53 = vadd.f32 %v456_v63, %v450_v45  ;;  %v492_v52 = vsel %vm1792_vm4, %v457_v62, 0.0  ;;  %v1874_v51 = vmax.f32 %v1609_v38, %v515_v37  ;;  %v528_v34 = vld [vmem:[%s2244_s0 + $0x9c] sm:$0xf]  ;;  %v1887_v22 = vmax.f32 %v1612_v40, %v516_v0  ;;  %v529_v31 = vld [vmem:[%s2244_s0 + $0xa4] sm:$0xff]  ;;  %v530_v2 = vld [vmem:[%s2244_s0 + $0xac] sm:$0xf] }
  0x5b   :  { %v494_v28 = vsel %vm163_vm0, %v492_v52, 0.0  ;;  %v1890_v38 = vmax.f32 %v1615_v23, %v517_v26  ;;  %v1893_v57 = vmax.f32 %v1618_v13, %v518_v1  ;;  %v531_v40 = vld [vmem:[%s2244_s0 + $0xb4] sm:$0xff]  ;;  %v1907_v23 = vmax.f32 %v1630_v39, %v519_v7  ;;  %v532_v63 = vld [vmem:[%s2244_s0 + $0xbc] sm:$0xf] }
  0x5c   :  { %v493_v45 = vsel %vm1812_vm5, %v458_v53, 0.0  ;;  %v1910_v13 = vmax.f32 %v1633_v48, %v520_v4  ;;  %v1913_v37 = vmax.f32 %v1645_v59, %v521_v25  ;;  %v1920_v62 = vmax.f32 %v1648_v61, %v522_v46  ;;  %v533_v61 = vld [vmem:[%s2244_s0 + $0xc4] sm:$0xff] }
  0x5d   :  { %v496_v0 = vsel %vm495_vm3, %v493_v45, 0.0  ;;  %v1923_v26 = vmax.f32 %v1651_v50, %v523_v16  ;;  %v1926_v39 = vmax.f32 %v1654_v15, %v524_v17  ;;  %v1929_v1 = vmax.f32 %v1662_v58, %v525_v24 }
  0x5e   :  { %v497_v48 = vadd.f32 %v496_v0, %v494_v28  ;;  %v1932_v59 = vmax.f32 %v1665_v9, %v526_v55  ;;  %v1935_v7 = vmax.f32 %v1668_v60, %v527_v54  ;;  %v1941_v50 = vmax.f32 %v1671_v3, %v528_v34  ;;  %v536_v28 = vld [vmem:[%s2244_s0 + $0xdc] sm:$0xf] }
  0x5f   :  { %v1944_v15 = vmax.f32 %v1674_v56, %v529_v31  ;;  %v1947_v4 = vmax.f32 %v1680_v5, %v530_v2  ;;  %v1950_v58 = vmax.f32 %v1683_v10, %v531_v40  ;;  %v1953_v60 = vmax.f32 %v1686_v44, %v532_v63  ;;  %v534_v56 = vld [vmem:[%s2244_s0 + $0xcc] sm:$0xf]  ;;  %v535_v5 = vld [vmem:[%s2244_s0 + $0xd4] sm:$0xff] }
  0x60   :  { %v498_v9 = vrot.slane %v497_v48, 4  ;;  %v569_v25 = vmax.f32 %v1836_v21, %v1851_v18  ;;  %v570_v3 = vmax.f32 %v1848_v8, %v1854_v29  ;;  %v577_v10 = vmax.f32 %v1857_v36, %v1874_v51 }
  0x61   :  { %v578_v44 = vmax.f32 %v1871_v32, %v1887_v22  ;;  %v587_v46 = vmax.f32 %v1890_v38, %v1907_v23  ;;  %v588_v53 = vmax.f32 %v1893_v57, %v1910_v13  ;;  %v1974_v16 = vmax.f32 %v1689_v20, %v533_v61 }
  0x62   :  { %v499_v52 = vadd.f32 %v498_v9, %v497_v48  ;;  %v571_v17 = vmax.f32 %v569_v25, %v1857_v36  ;;  %v572_v24 = vmax.f32 %v570_v3, %v1871_v32  ;;  %v579_v55 = vmax.f32 %v577_v10, %v1890_v38 }
  0x63   :  { %v580_v54 = vmax.f32 %v578_v44, %v1893_v57  ;;  %v589_v34 = vmax.f32 %v587_v46, %v1913_v37  ;;  %v590_v45 = vmax.f32 %v588_v53, %v1920_v62  ;;  %v1986_v31 = vmax.f32 %v1692_v11, %v534_v56  ;;  %v537_v56 = vld [vmem:[%s2244_s0 + $0xe4] sm:$0xff] }
  0x64   :  { %v1989_v20 = vmax.f32 %v1710_v6, %v535_v5  ;;  %v573_v2 = vmax.f32 %v571_v17, %v1874_v51  ;;  %v574_v40 = vmax.f32 %v572_v24, %v1887_v22  ;;  %v581_v0 = vmax.f32 %v579_v55, %v1907_v23 }
  0x65   :  { %v582_v63 = vmax.f32 %v580_v54, %v1910_v13  ;;  %v591_v48 = vmax.f32 %v589_v34, %v1923_v26  ;;  %v592_v61 = vmax.f32 %v590_v45, %v1926_v39  ;;  %v1998_v9 = vmax.f32 %v1727_v49, %v536_v28  ;;  %v538_v49 = vld [vmem:[%s2244_s0 + $0xec] sm:$0xf] }
  0x66   :  { %v575_v11 = vmax.f32 %v573_v2, %v1890_v38  ;;  %v576_v6 = vmax.f32 %v574_v40, %v1893_v57  ;;  %v597_v25 = vmax.f32 %v1913_v37, %v1923_v26  ;;  %v500_v3 = vrot.slane %v499_v52, 2 }
  0x67   :  { %v583_v5 = vmax.f32 %v581_v0, %v1913_v37  ;;  %v584_v10 = vmax.f32 %v582_v63, %v1920_v62  ;;  %v593_v44 = vmax.f32 %v591_v48, %v1929_v1  ;;  %v594_v46 = vmax.f32 %v592_v61, %v1932_v59 }
  0x68   :  { %v598_v53 = vmax.f32 %v1920_v62, %v1926_v39  ;;  %v599_v17 = vmax.f32 %v597_v25, %v1929_v1  ;;  %v607_v24 = vmax.f32 %v1929_v1, %v1935_v7  ;;  %v608_v54 = vmax.f32 %v1932_v59, %v1941_v50 }
  0x69   :  { %v585_v28 = vadd.f32 %v583_v5, %v575_v11  ;;  %v586_v55 = vadd.f32 %v584_v10, %v576_v6  ;;  %v617_v34 = vmax.f32 %v1944_v15, %v1950_v58  ;;  %v2024_v45 = vmax.f32 %v1736_v43, %v537_v56 }
  0x6a   :  { %v600_v2 = vmax.f32 %v598_v53, %v1932_v59  ;;  %v601_v40 = vmax.f32 %v599_v17, %v1935_v7  ;;  %v609_v0 = vmax.f32 %v607_v24, %v1944_v15  ;;  %v2030_v63 = vmax.f32 %v1739_v14, %v538_v49 }
  0x6b   :  { %v595_v48 = vadd.f32 %v593_v44, %v585_v28  ;;  %v610_v61 = vmax.f32 %v608_v54, %v1947_v4  ;;  %v618_v11 = vmax.f32 %v1947_v4, %v1953_v60  ;;  %v596_v6 = vadd.f32 %v594_v46, %v586_v55  ;;  %v2061_v55 = vld [vmem:[%s2244_s0 + $0x15] sm:$0xff] }
  0x6c   :  { %v602_v25 = vmax.f32 %v600_v2, %v1941_v50  ;;  %v603_v43 = vmax.f32 %v601_v40, %v1944_v15  ;;  %v611_v56 = vmax.f32 %v609_v0, %v1950_v58  ;;  %v2038_v5 = vadd.f32 %v500_v3, %v499_v52  ;;  %v2051_v52 = vld [vmem:[%s2244_s0 + $0x5] sm:$0xff]  ;;  %v2056_v3 = vld [vmem:[%s2244_s0 + $0xd] sm:$0x7]  ;;  %v2068_v0 = vld [vmem:[%s2244_s0 + $0x1d] sm:$0x7] }
  0x6d   :  { %v612_v10 = vmax.f32 %v610_v61, %v1953_v60  ;;  %v619_v14 = vmax.f32 %v617_v34, %v1974_v16  ;;  %v620_v44 = vmax.f32 %v618_v11, %v1986_v31  ;;  %v756_v54 = vshrl.u32 %v1527_v42, 1  ;;  %v2078_v61 = vld [vmem:[%s2244_s0 + $0x2d] sm:$0x7]  ;;  %v658_v34 = vld [vmem:[%s2244_s0 + $0x75] sm:$0xff] }
  0x6e   :  { %v604_v49 = vmax.f32 %v602_v25, %v1947_v4  ;;  %v605_v53 = vadd.f32 %v603_v43, %v595_v48  ;;  %v613_v17 = vmax.f32 %v611_v56, %v1974_v16  ;;  %v2073_v48 = vld [vmem:[%s2244_s0 + $0x25] sm:$0xff]  ;;  %v2083_v11 = vadd.f32 %v334_v35, %v1772_v12  ;;  %v650_v56 = vld [vmem:[%s2244_s0 + $0x35] sm:$0xff]  ;;  %v653_v35 = vld [vmem:[%s2244_s0 + $0x4d] sm:$0x7] }
  0x6f   :  { %v614_v46 = vmax.f32 %v612_v10, %v1986_v31  ;;  %v621_v24 = vmax.f32 %v619_v14, %v1989_v20  ;;  %v622_v28 = vmax.f32 %v620_v44, %v1998_v9  ;;  %v651_v10 = vld [vmem:[%s2244_s0 + $0x3d] sm:$0x7]  ;;  %v652_v14 = vld [vmem:[%s2244_s0 + $0x45] sm:$0xff]  ;;  %v654_v44 = vld [vmem:[%s2244_s0 + $0x55] sm:$0xff] }
  0x70   :  { %v606_v2 = vadd.f32 %v604_v49, %v596_v6  ;;  %v615_v40 = vadd.f32 %v613_v17, %v605_v53  ;;  %v502_v6 = vrot.slane %v2038_v5, 1  ;;  %v655_v49 = vld [vmem:[%s2244_s0 + $0x5d] sm:$0x7]  ;;  %v674_v53 = vmax.f32 %v1836_v21, %v2051_v52 }
  0x71   :  { %v623_v25 = vmax.f32 %v621_v24, %v2024_v45  ;;  %v624_v43 = vmax.f32 %v622_v28, %v2030_v63  ;;  %v675_v17 = vmax.f32 %v1848_v8, %v2056_v3  ;;  %v656_v28 = vld [vmem:[%s2244_s0 + $0x65] sm:$0xff]  ;;  %v677_v21 = vmax.f32 %v1854_v29, %v2068_v0  ;;  %v659_v3 = vld [vmem:[%s2244_s0 + $0x7d] sm:$0x7] }
  0x72   :  { %v616_v12 = vadd.f32 %v614_v46, %v606_v2  ;;  %v676_v46 = vmax.f32 %v1851_v18, %v2061_v55  ;;  %v657_v2 = vld [vmem:[%s2244_s0 + $0x6d] sm:$0x7]  ;;  %v678_v8 = vmax.f32 %v1857_v36, %v2073_v48  ;;  %v679_v18 = vmax.f32 %v1871_v32, %v2078_v61  ;;  %v660_v55 = vld [vmem:[%s2244_s0 + $0x85] sm:$0xff]  ;;  %v662_v48 = vld [vmem:[%s2244_s0 + $0x95] sm:$0xff] }
  0x73   :  { %v625_v24 = vadd.f32 %v623_v25, %v615_v40  ;;  %v661_v40 = vld [vmem:[%s2244_s0 + $0x8d] sm:$0x7]  ;;  %v680_v29 = vmax.f32 %v1874_v51, %v650_v56  ;;  %v681_v36 = vmax.f32 %v1887_v22, %v651_v10  ;;  %v682_v0 = vmax.f32 %v1890_v38, %v652_v14  ;;  %v663_v61 = vld [vmem:[%s2244_s0 + $0x9d] sm:$0x7]  ;;  %v664_v56 = vld [vmem:[%s2244_s0 + $0xa5] sm:$0xff] }
  0x74   :  { %v626_v52 = vadd.f32 %v624_v43, %v616_v12  ;;  %v665_v25 = vld [vmem:[%s2244_s0 + $0xad] sm:$0x7]  ;;  %v683_v51 = vmax.f32 %v1893_v57, %v653_v35  ;;  %v2152_v22 = vmax.f32 %v1907_v23, %v654_v44  ;;  %v2155_v33 = vmax.f32 %v1910_v13, %v655_v49  ;;  %v666_v10 = vld [vmem:[%s2244_s0 + $0xb5] sm:$0xff]  ;;  %v667_v57 = vld [vmem:[%s2244_s0 + $0xbd] sm:$0x7] }
  0x75   :  { %v627_v32 = vsel %vm1792_vm4, %v625_v24, 0.0  ;;  %v686_v23 = vmax.f32 %v1913_v37, %v656_v28  ;;  %v687_v13 = vmax.f32 %v1920_v62, %v657_v2  ;;  %v2175_v14 = vld [vmem:[%s2244_s0 + $0xc5] sm:$0xff]  ;;  %v688_v12 = vmax.f32 %v1923_v26, %v658_v34  ;;  %v2183_v37 = vld [vmem:[%s2244_s0 + $0xcd] sm:$0x7] }
  0x76   :  { %v628_v38 = vsel %vm1812_vm5, %v626_v52, 0.0  ;;  %v629_v43 = vsel %vm163_vm0, %v627_v32, 0.0  ;;  %v689_v35 = vmax.f32 %v1926_v39, %v659_v3  ;;  %v690_v44 = vmax.f32 %v1929_v1, %v660_v55  ;;  %v670_v52 = vld [vmem:[%s2244_s0 + $0xd5] sm:$0xff] }
  0x77   :  { %v631_v47 = vsel %vm630_vm6, %v628_v38, 0.0  ;;  %v691_v62 = vmax.f32 %v1932_v59, %v661_v40  ;;  %v692_v24 = vmax.f32 %v1935_v7, %v662_v48  ;;  %v693_v28 = vmax.f32 %v1941_v50, %v663_v61  ;;  %v671_v50 = vld [vmem:[%s2244_s0 + $0xdd] sm:$0x7] }
  0x78   :  { %v632_v49 = vadd.f32 %v631_v47, %v629_v43  ;;  %v694_v2 = vmax.f32 %v1944_v15, %v664_v56  ;;  %v695_v26 = vmax.f32 %v1947_v4, %v665_v25  ;;  %v696_v39 = vmax.f32 %v1950_v58, %v666_v10 }
  0x79   :  { %v2192_v1 = vmax.f32 %v1953_v60, %v667_v57  ;;  %v698_v59 = vmax.f32 %v1974_v16, %v2175_v14  ;;  %v704_v7 = vmax.f32 %v674_v53, %v676_v46  ;;  %v705_v3 = vmax.f32 %v675_v17, %v677_v21 }
  0x7a   :  { %v633_v34 = vrot.slane %v632_v49, 4  ;;  %v699_v15 = vmax.f32 %v1986_v31, %v2183_v37  ;;  %v714_v4 = vmax.f32 %v680_v29, %v682_v0  ;;  %v715_v58 = vmax.f32 %v681_v36, %v683_v51  ;;  %v672_v31 = vld [vmem:[%s2244_s0 + $0xe5] sm:$0xff] }
  0x7b   :  { %v726_v60 = vmax.f32 %v686_v23, %v688_v12  ;;  %v706_v40 = vmax.f32 %v704_v7, %v678_v8  ;;  %v707_v32 = vmax.f32 %v705_v3, %v679_v18  ;;  %v727_v48 = vmax.f32 %v687_v13, %v689_v35 }
  0x7c   :  { %v634_v55 = vadd.f32 %v633_v34, %v632_v49  ;;  %v700_v61 = vmax.f32 %v1989_v20, %v670_v52  ;;  %v716_v16 = vmax.f32 %v714_v4, %v2152_v22  ;;  %v717_v53 = vmax.f32 %v715_v58, %v2155_v33 }
  0x7d   :  { %v728_v17 = vmax.f32 %v726_v60, %v690_v44  ;;  %v701_v46 = vmax.f32 %v1998_v9, %v671_v50  ;;  %v708_v21 = vmax.f32 %v706_v40, %v680_v29  ;;  %v709_v25 = vmax.f32 %v707_v32, %v681_v36 }
  0x7e   :  { %v729_v38 = vmax.f32 %v727_v48, %v691_v62  ;;  %v718_v43 = vmax.f32 %v716_v16, %v686_v23  ;;  %v719_v8 = vmax.f32 %v717_v53, %v687_v13  ;;  %v738_v56 = vmax.f32 %v692_v24, %v694_v2  ;;  %v673_v23 = vld [vmem:[%s2244_s0 + $0xed] sm:$0x7]  ;;  %s883_s0 = smov [#allocation2]  }
  0x7f   :  { %v730_v18 = vmax.f32 %v728_v17, %v692_v24  ;;  %v635_v10 = vrot.slane %v634_v55, 2  ;;  %v710_v20 = vmax.f32 %v708_v21, %v682_v0  ;;  %v711_v57 = vmax.f32 %v709_v25, %v683_v51  ;;  %s836_s5 = sshll.u32 %s883_s0, 4  ;;  %s837_s5 = int_to_ptr.vmem [resolvable:$true] %s836_s5 }
  0x80   :  { %v731_v47 = vmax.f32 %v729_v38, %v693_v28  ;;  %v720_v14 = vmax.f32 %v718_v43, %v688_v12  ;;  %v721_v49 = vmax.f32 %v719_v8, %v689_v35  ;;  %v739_v34 = vmax.f32 %v693_v28, %v695_v26  ;;  %s859_s6 = scalar_lea.vmem %s837_s5, 16  ;;  %s863_s7 = scalar_lea.vmem %s837_s5, 32 }
  0x81   :  { %v732_v37 = vmax.f32 %v730_v18, %v694_v2  ;;  %v702_v9 = vmax.f32 %v2024_v45, %v672_v31  ;;  %v712_v29 = vmax.f32 %v710_v20, %v2152_v22  ;;  %v713_v36 = vmax.f32 %v711_v57, %v2155_v33  ;;  %p860_p0 = scmp.ne.s32.totalorder %s837_s5, %s859_s6  ;;  %p864_p1 = scmp.lt.s32.totalorder %s837_s5, %s837_s5 }
  0x82   :  { %v733_v52 = vmax.f32 %v731_v47, %v695_v26  ;;  %v722_v13 = vmax.f32 %v720_v14, %v690_v44  ;;  %v723_v24 = vmax.f32 %v721_v49, %v691_v62  ;;  %v740_v51 = vmax.f32 %v738_v56, %v696_v39  ;;  %p865_p2 = scmp.lt.s32.totalorder %s863_s7, %s859_s6 }
  0x83   :  { %v734_v0 = vmax.f32 %v732_v37, %v696_v39  ;;  %v636_v7 = vadd.f32 %v635_v10, %v634_v55  ;;  %v741_v35 = vmax.f32 %v739_v34, %v2192_v1  ;;  %v757_v45 = vmul.u32 3, %v756_v54 }
  0x84   :  { %v735_v12 = vmax.f32 %v733_v52, %v2192_v1  ;;  %v724_v22 = vadd.f32 %v722_v13, %v712_v29  ;;  %v725_v28 = vadd.f32 %v723_v24, %v713_v36  ;;  %v742_v33 = vmax.f32 %v740_v51, %v698_v59  ;;  %p866_p3 = por %p865_p2, %p864_p1 }
  0x85   :  { %v767_v2 = vshrl.u32 %v1786_v19, 1  ;;  %v336_v26 = vmax.f32 %v2083_v11, 0.0  ;;  %v703_v44 = vmax.f32 %v2030_v63, %v673_v23  ;;  %v743_v62 = vmax.f32 %v741_v35, %v699_v15 }
  0x86   :  { %v758_v39 = vsub.s32 %v1007_v41, %v757_v45  ;;  %v503_v3 = vadd.f32 %v502_v6, %v2038_v5  ;;  %v736_v1 = vadd.f32 %v734_v0, %v724_v22  ;;  %v744_v50 = vmax.f32 %v742_v33, %v700_v61  ;;  %p867_p4 = pnand %p866_p3, %p860_p0 }
  0x87   :  { %v768_v42 = vmul.u32 3, %v767_v2  ;;  %v737_v54 = vadd.f32 %v735_v12, %v725_v28  ;;  %v745_v4 = vmax.f32 %v743_v62, %v701_v46  ;;  %v637_v59 = vrot.slane %v636_v7, 1 }
  0x88   :  { %vm772_vm7 = vcmp.ne.s32.totalorder %v758_v39, 0  ;;  %vm774_vm8 = vcmp.lt.s32.totalorder %v758_v39, 0  ;;  %v746_v19 = vmax.f32 %v744_v50, %v702_v9  ;;  %v778_v63 = vadd.s32 3, %v758_v39 }
  0x89   :  { %v769_v11 = vsub.s32 %v1522_v27, %v768_v42  ;;  %vm776_vm9 = vmand %vm774_vm8, %vm772_vm7  ;;  %v2255_v15 = vmax.f32 %v1808_v30, 0.0  ;;  %v747_v58 = vmax.f32 %v745_v4, %v703_v44  ;;  %v337_v6 = vadd.f32 1.0, %v336_v26 }
  0x8a   :  { %v748_v60 = vadd.f32 %v746_v19, %v736_v1  ;;  %v504_v55 = vmax.f32 %v503_v3, 0.0  ;;  %v780_v32 = vsel %vm776_vm9, %v778_v63, %v758_v39  ;;  %v638_v48 = vadd.f32 %v637_v59, %v636_v7 }
  0x8b   :  { %v175_v41 = vadd.f32 1.0, %v2255_v15  ;;  %vm773_vm10 = vcmp.ne.s32.totalorder %v769_v11, 0  ;;  %vm775_vm11 = vcmp.lt.s32.totalorder %v769_v11, 0  ;;  %v779_v5 = vadd.s32 3, %v769_v11 }
  0x8c   :  { %v749_v40 = vadd.f32 %v747_v58, %v737_v54  ;;  %vm777_vm12 = vmand %vm775_vm11, %vm773_vm10  ;;  %vm782_vm13 = vcmp.eq.s32.totalorder %v780_v32, 0  ;;  %v505_v17 = vadd.f32 1.0, %v504_v55  ;;  %v639_v46 = vmax.f32 %v638_v48, 0.0 }
  0x8d   :  { %v781_v61 = vsel %vm777_vm12, %v779_v5, %v769_v11  ;;  %v788_v27 = vsel %vm782_vm13, %v748_v60, 0.0  ;;  %849 = vlog2.f32 %v175_v41 }
  0x8e   :  { %vm783_vm15 = vcmp.eq.s32.totalorder %v781_v61, 0  ;;  %v790_v30 = vsel %vm163_vm0, %v788_v27, 0.0  ;;  %851 = vlog2.f32 %v337_v6  ;;  %v640_v38 = vadd.f32 1.0, %v639_v46 }
  0x8f   :  { %v789_v16 = vsel %vm783_vm15, %v749_v40, 0.0  ;;  %853 = vlog2.f32 %v505_v17  ;;  %vm828_vm0 = vcmask 57344  }
  0x90   :  { %v792_v53 = vsel %vm791_vm14, %v789_v16, 0.0  ;;  %855 = vlog2.f32 %v640_v38 }
  0x91   :  { %v793_v21 = vadd.f32 %v792_v53, %v790_v30 }
  0x93   :  { %v794_v25 = vrot.slane %v793_v21, 4 }
  0x95   :  { %v795_v31 = vadd.f32 %v794_v25, %v793_v21 }
  0x97   :  { %v796_v43 = vrot.slane %v795_v31, 2  ;;  %v850_v18 = vpop.eup %849 }
  0x98   :  { %v852_v56 = vpop.eup %851  ;;  %v177_v57 = vmul.f32 0.6931472, %v850_v18 }
  0x99   :  { %v797_v8 = vadd.f32 %v796_v43, %v795_v31  ;;  %v339_v47 = vmul.f32 0.6931472, %v852_v56  ;;  %v854_v14 = vpop.eup %853 }
  0x9a   :  { %v179_v34 = vmul.f32 1.442695, %v177_v57  ;;  %v507_v29 = vmul.f32 0.6931472, %v854_v14  ;;  %v856_v36 = vpop.eup %855 }
  0x9b   :  { %v798_v10 = vrot.slane %v797_v8, 1  ;;  %v340_v9 = vmul.f32 1.442695, %v339_v47  ;;  %v642_v23 = vmul.f32 0.6931472, %v856_v36 }
  0x9c   :  { %v508_v52 = vmul.f32 1.442695, %v507_v29 }
  0x9d   :  { %v799_v20 = vadd.f32 %v798_v10, %v797_v8  ;;  %v806_v13 = vadd.f32 %v340_v9, %v179_v34  ;;  %v643_v24 = vmul.f32 1.442695, %v642_v23 }
  0x9f   :  { %v800_v49 = vmax.f32 %v799_v20, 0.0  ;;  %v807_v0 = vadd.f32 %v806_v13, %v508_v52 }
  0xa1   :  { %v801_v37 = vadd.f32 1.0, %v800_v49  ;;  %v808_v12 = vadd.f32 %v807_v0, %v643_v24 }
  0xa3   :  { %857 = vlog2.f32 %v801_v37 }
  0xad   :  { %v858_v51 = vpop.eup %857 }
  0xae   :  { %v803_v7 = vmul.f32 0.6931472, %v858_v51 }
  0xb0   :  { %v804_v35 = vmul.f32 1.442695, %v803_v7 }
  0xb2   :  { %v809_v45 = vadd.f32 %v808_v12, %v804_v35 }
  0xb4   :  { %v811_v22 = vmul.f32 0.2, %v809_v45 }
  0xb6   :  { %v812_v28 = vsub.f32 %v179_v34, %v811_v22  ;;  %v815_v33 = vsub.f32 %v340_v9, %v811_v22  ;;  %v818_v2 = vsub.f32 %v508_v52, %v811_v22  ;;  %v821_v26 = vsub.f32 %v643_v24, %v811_v22 }
  0xb7   :  { %v824_v3 = vsub.f32 %v804_v35, %v811_v22 }
  0xb8   :  { %v813_v44 = vmul.f32 0.8983706, %v812_v28  ;;  %v816_v62 = vmul.f32 0.3134081, %v815_v33  ;;  %v819_v39 = vmul.f32 -0.101629384, %v818_v2 }
  0xb9   :  { %v822_v50 = vmul.f32 -0.4235575, %v821_v26  ;;  %v825_v54 = vmul.f32 -0.68659186, %v824_v3 }
  0xba   :  { %v817_v1 = vadd.f32 %v816_v62, %v813_v44 }
  0xbc   :  { %v820_v42 = vadd.f32 %v819_v39, %v817_v1 }
  0xbe   :  { %v823_v4 = vadd.f32 %v822_v50, %v820_v42 }
  0xc0   :  { %v826_v59 = vadd.f32 %v825_v54, %v823_v4 }
  0xc2   :  { %v827_v19 = vmul.f32 0.6383934, %v826_v59 }
  0xc4   :  { %829 = vst.msk [vmem:[#allocation2] sm:$0x1] %vm828_vm0, %v827_v19 }
  0xc5   :  { %870 = shalt.err (!%p867_p4)
}
  0xc6   :  { %s871_s10 = scalar_lea.hbm %s2245_s1, 16 }
  0xc7   :  { %p872_p5 = scmp.ne.s32.totalorder %s2245_s1, %s871_s10  ;;  %p875_p6 = scmp.lt.u32.totalorder %s871_s10, %s2245_s1 }
  0xc9   :  { %p877_p7 = pnand %p875_p6, %p872_p5 }
  0xcb   :  { %880 = shalt.err (!%p877_p7)
}
  0xcc   :  { %839 = dma.vmem_to_hbm [thread:$0]  %s837_s5, 16, %s2245_s1, [#allocation3]  }
  0xcd   :  { %881 = dma.done.wait [#allocation3], 16  }
  0xce   :  { %882 = vsyncadd [#allocation3], 4294967280 }
  0xcf   :  { %843 = vsyncpa [#allocation3], 1 }

</bundles_post_ra>
